<compile_context>
chip_gen: v7x
topology: tpu7x:2x2x1
jax: 0.10.0
libtpu: 0.0.40
codegen_flags: <defaults>
</compile_context>

<pallas_src>
import functools

import jax
import jax.numpy as jnp
from jax.experimental import pallas as pl
from jax.experimental.pallas import tpu as pltpu

LN_EPS = 1e-5          # torch.nn.LayerNorm default
NEG_INF = -1e30        # mask for non-neighbor keys (bf16-representable); exp() -> exactly 0


def _layernorm(x, g, b):
    mu = jnp.mean(x, axis=-1, keepdims=True)
    var = jnp.mean(jnp.square(x - mu), axis=-1, keepdims=True)
    return (x - mu) * jax.lax.rsqrt(var + LN_EPS) * g + b


def _vmem_limit(block_bytes):
    # double-buffered blocks + headroom, capped well below v7x's 64 MiB physical VMEM.
    return int(min(48 * 1024 * 1024,
                   max(16 * 1024 * 1024, 2 * block_bytes + 4 * 1024 * 1024)))


def _row_tile(n, target=1024):
    # token-row tile for the LN/QKV and MLP kernels (row-wise ops: ragged tail is safe).
    return n if n <= target else target


def _attn_row_tile(h, w, target_rows=128):
    # query tile = an integer number of image rows, token count sublane(8)-aligned.
    cand = [d for d in range(1, h + 1)
            if h % d == 0 and d * w <= target_rows and (d * w) % 8 == 0]
    return max(cand) if cand else h          # returns TR (image rows per query tile)


# ---------------- Kernel A: LayerNorm(norm1) fused with QKV projection ----------------
def ln_qkv_kernel(x_ref, g_ref, b_ref, w_ref, bq_ref, qkv_ref):
    x = x_ref[...].astype(jnp.float32)                       # (TN, C)
    xn = _layernorm(x, g_ref[...].astype(jnp.float32), b_ref[...].astype(jnp.float32))
    qkv = jnp.dot(xn, w_ref[...].astype(jnp.float32),
                  preferred_element_type=jnp.float32) + bq_ref[...].astype(jnp.float32)
    # single fused lane-dense store; torch layout of 3C is (3, nh, hd): q | k | v head-major.
    qkv_ref[...] = qkv.astype(qkv_ref.dtype)


def ln_qkv(x2d, g, b, w, bq, out_dtype):
    N, C = x2d.shape
    C3 = w.shape[1]
    tn = _row_tile(N)
    grid = (pl.cdiv(N, tn),)
    blk_bytes = (tn * C * 4 + C * C3 * 4 + (2 * C + C3) * 4
                 + tn * C3 * jnp.dtype(out_dtype).itemsize)
    return pl.pallas_call(
        ln_qkv_kernel,
        out_shape=jax.ShapeDtypeStruct((N, C3), out_dtype),
        grid=grid,
        in_specs=[
            pl.BlockSpec((tn, C), lambda i: (i, 0)),
            pl.BlockSpec((1, C), lambda i: (0, 0)),
            pl.BlockSpec((1, C), lambda i: (0, 0)),
            pl.BlockSpec((C, C3), lambda i: (0, 0)),
            pl.BlockSpec((1, C3), lambda i: (0, 0)),
        ],
        out_specs=pl.BlockSpec((tn, C3), lambda i: (i, 0)),
        compiler_params=pltpu.CompilerParams(
            dimension_semantics=("parallel",),
            vmem_limit_bytes=_vmem_limit(blk_bytes)),
    )(x2d, g.reshape(1, C), b.reshape(1, C), w, bq.reshape(1, C3))


# ----- Kernel B: banded neighborhood attention + output projection + residual -----
def nat_attn_proj_kernel(qkv_ref, bm_ref, sc_ref, wp_ref, bp_ref, o_ref, *,
                         num_heads, head_dim, scale, C, H, W, TR, BAND, pad, t_axis):
    TQ = TR * W
    KB = BAND * W
    t = pl.program_id(t_axis)
    # key row band covering every clamped ks x ks neighborhood of this query-row tile
    r0 = jnp.clip(t * TR - pad, 0, H - BAND)
    koff = r0 * W
    if W % 8 == 0:
        koff = pl.multiple_of(koff, 8)
    qoff = pl.multiple_of(t * TQ, 8)

    band = qkv_ref[pl.ds(koff, KB), :]        # (KB, 3C)  key/value band, stored dtype (bf16)
    qtile = qkv_ref[pl.ds(qoff, TQ), :]       # (TQ, 3C)  query tile (same image block)

    nt = (((1,), (1,)), ((), ()))             # contract feature dims: q @ k^T on the MXU
    heads = []
    for h in range(num_heads):
        lo = h * head_dim
        hi = lo + head_dim
        qs = qtile[:, lo:hi]                  # (TQ, hd)  bf16 MXU operand
        ks = band[:, C + lo:C + hi]           # (KB, hd)
        vs = band[:, 2 * C + lo:2 * C + hi]   # (KB, hd)
        s = jax.lax.dot_general(qs, ks, nt, preferred_element_type=jnp.float32)
        s = s * scale + bm_ref[h].astype(jnp.float32)       # rel-pos bias, -1e30 off-window
        m = jnp.max(s, axis=-1, keepdims=True)
        p = jnp.exp(s - m)                                   # f32 softmax internals
        p = p * pl.reciprocal(jnp.sum(p, axis=-1, keepdims=True), approx=True)
        heads.append(jnp.dot(p.astype(vs.dtype), vs, preferred_element_type=jnp.float32))
    ocat = jnp.concatenate(heads, axis=-1)                   # (TQ, C) head-major, f32
    proj = jnp.dot(ocat, wp_ref[...].astype(jnp.float32),    # single projection matmul
                   preferred_element_type=jnp.float32)
    o_ref[...] = (sc_ref[...].astype(jnp.float32)
                  + bp_ref[...].astype(jnp.float32) + proj).astype(o_ref.dtype)


def nat_attention_proj(qkv, bias_tab, shortcut, w_proj, b_proj, *,
                       num_heads, scale, H, W, TR, BAND, pad):
    B, HW, C3 = qkv.shape
    C = C3 // 3
    hd = C // num_heads
    TQ = TR * W
    KB = BAND * W
    T = HW // TQ

    # Keep the biggest constant-index operand resident across the inner grid axis.
    bias_blk_bytes = num_heads * TQ * KB * bias_tab.dtype.itemsize
    img_blk_bytes = HW * C3 * qkv.dtype.itemsize
    bias_inner = bias_blk_bytes >= img_blk_bytes
    if bias_inner:                       # grid (T, B): batch innermost, bias block resident
        grid, t_axis = (T, B), 0
        tile_map = lambda t, b: (b, t, 0)
        img_map = lambda t, b: (b, 0, 0)
        bias_map = lambda t, b: (0, t, 0)
        const_map = lambda t, b: (0, 0)
    else:                                # grid (B, T): tile innermost, per-image qkv resident
        grid, t_axis = (B, T), 1
        tile_map = lambda b, t: (b, t, 0)
        img_map = lambda b, t: (b, 0, 0)
        bias_map = lambda b, t: (0, t, 0)
        const_map = lambda b, t: (0, 0)

    kern = functools.partial(nat_attn_proj_kernel,
                             num_heads=num_heads, head_dim=hd, scale=scale,
                             C=C, H=H, W=W, TR=TR, BAND=BAND, pad=pad, t_axis=t_axis)
    blk_bytes = (img_blk_bytes + bias_blk_bytes
                 + TQ * C * (shortcut.dtype.itemsize + 4) + C * C * 4 + C * 4)
    return pl.pallas_call(
        kern,
        out_shape=jax.ShapeDtypeStruct((B, HW, C), shortcut.dtype),
        grid=grid,
        in_specs=[
            pl.BlockSpec((None, HW, C3), img_map),            # fused qkv, one block per image
            pl.BlockSpec((num_heads, TQ, KB), bias_map),      # banded bias/mask (no batch dim)
            pl.BlockSpec((None, TQ, C), tile_map),            # residual shortcut tile
            pl.BlockSpec((C, C), const_map),                  # proj weight
            pl.BlockSpec((1, C), const_map),                  # proj bias
        ],
        out_specs=pl.BlockSpec((None, TQ, C), tile_map),
        compiler_params=pltpu.CompilerParams(
            dimension_semantics=("parallel", "parallel"),
            vmem_limit_bytes=_vmem_limit(blk_bytes)),
    )(qkv, bias_tab, shortcut, w_proj, b_proj.reshape(1, C))


# -------- Kernel D: LayerNorm(norm2) + MLP (fc1 -> GELU -> fc2) + residual --------
def mlp_residual_kernel(x_ref, g_ref, b_ref, w1_ref, b1_ref, w2_ref, b2_ref, o_ref):
    x = x_ref[...].astype(jnp.float32)
    xn = _layernorm(x, g_ref[...].astype(jnp.float32), b_ref[...].astype(jnp.float32))
    h = jnp.dot(xn, w1_ref[...].astype(jnp.float32),
                preferred_element_type=jnp.float32) + b1_ref[...].astype(jnp.float32)
    h = jax.nn.gelu(h, approximate=False)     # exact erf GELU == torch.nn.GELU default
    y = jnp.dot(h, w2_ref[...].astype(jnp.float32),
                preferred_element_type=jnp.float32) + b2_ref[...].astype(jnp.float32)
    o_ref[...] = (x + y).astype(o_ref.dtype)


def mlp_residual(x2d, g, b, w1, b1, w2, b2):
    N, C = x2d.shape
    Ch = w1.shape[1]
    tn = _row_tile(N)
    grid = (pl.cdiv(N, tn),)
    blk_bytes = (2 * tn * C + tn * Ch + 2 * C * Ch + 2 * C + Ch) * 4
    return pl.pallas_call(
        mlp_residual_kernel,
        out_shape=jax.ShapeDtypeStruct((N, C), x2d.dtype),
        grid=grid,
        in_specs=[
            pl.BlockSpec((tn, C), lambda i: (i, 0)),
            pl.BlockSpec((1, C), lambda i: (0, 0)),
            pl.BlockSpec((1, C), lambda i: (0, 0)),
            pl.BlockSpec((C, Ch), lambda i: (0, 0)),
            pl.BlockSpec((1, Ch), lambda i: (0, 0)),
            pl.BlockSpec((Ch, C), lambda i: (0, 0)),
            pl.BlockSpec((1, C), lambda i: (0, 0)),
        ],
        out_specs=pl.BlockSpec((tn, C), lambda i: (i, 0)),
        compiler_params=pltpu.CompilerParams(
            dimension_semantics=("parallel",),
            vmem_limit_bytes=_vmem_limit(blk_bytes)),
    )(x2d, g.reshape(1, C), b.reshape(1, C), w1, b1.reshape(1, Ch), w2, b2.reshape(1, C))


# ------------- neighborhood geometry: banded bias/mask table (built once per layer) -------------
def make_banded_bias(rpb, H, W, kernel_size, TR=None, dtype=jnp.bfloat16):
    """(nh, H*W, BAND*W) additive table: rel-pos-bias where the key lies in the clamped
    ks x ks neighborhood of the query, NEG_INF elsewhere.  Key axis is relative to the
    row band r0 = clip(tile_row_start - pad, 0, H - BAND) of the query's row tile.
    Batch-independent — compute ONCE per layer and pass to nat_layer_forward."""
    ks = kernel_size
    pad = ks // 2
    if TR is None:
        TR = _attn_row_tile(H, W)
    BAND = min(H, TR + ks - 1)

    qi = jnp.arange(H)
    r0 = jnp.clip((qi // TR) * TR - pad, 0, H - BAND)              # band start per query row
    si = jnp.clip(qi - pad, 0, H - ks)                             # window start per query row
    kr = r0[:, None] + jnp.arange(BAND)[None, :]                   # (H, BAND) absolute key rows
    row_in = (kr >= si[:, None]) & (kr < si[:, None] + ks)
    dr = jnp.clip(kr - qi[:, None] + (ks - 1), 0, 2 * ks - 2)

    qj = jnp.arange(W)
    kj = jnp.arange(W)
    sj = jnp.clip(qj - pad, 0, W - ks)
    col_in = (kj[None, :] >= sj[:, None]) & (kj[None, :] < sj[:, None] + ks)  # (W, W)
    dc = jnp.clip(kj[None, :] - qj[:, None] + (ks - 1), 0, 2 * ks - 2)        # (W, W)

    bias = rpb[:, dr[:, None, :, None], dc[None, :, None, :]]      # (nh, H, W, BAND, W)
    mask = row_in[:, None, :, None] & col_in[None, :, None, :]     # (H, W, BAND, W)
    bm = jnp.where(mask[None], bias.astype(jnp.float32), jnp.float32(NEG_INF))
    return bm.reshape(rpb.shape[0], H * W, BAND * W).astype(dtype), BAND, TR


def _window_indices(H, W, ks):
    pad = ks // 2
    si = jnp.clip(jnp.arange(H) - pad, 0, H - ks)
    sj = jnp.clip(jnp.arange(W) - pad, 0, W - ks)
    rows = si[:, None] + jnp.arange(ks)[None, :]
    cols = sj[:, None] + jnp.arange(ks)[None, :]
    return rows, cols


def _gather_neighborhood(t, rows, cols):
    ri = rows[:, None, :, None]
    cj = cols[None, :, None, :]
    return t[:, :, ri, cj, :]


# ---------------- full NATLayer forward ----------------
def nat_layer_forward(x, params, num_heads, kernel_size, bias_tab=None,
                      qkv_dtype=jnp.bfloat16):
    B, H, W, C = x.shape
    HW = H * W
    N = B * HW
    hd = C // num_heads
    scale = hd ** -0.5                         # qk_scale=None default
    TR = _attn_row_tile(H, W)
    if bias_tab is None:
        bias_tab, BAND, TR = make_banded_bias(params["rpb"], H, W, kernel_size, TR)
    else:
        BAND = bias_tab.shape[-1] // W
        assert BAND == min(H, TR + kernel_size - 1), "bias_tab built with a different tile"

    x2d = x.reshape(N, C)
    # LN1 + fused QKV -> single (N, 3C) bf16 slab (one lane-dense store, half HBM traffic).
    qkv = ln_qkv(x2d, params["ln1_g"], params["ln1_b"],
                 params["w_qkv"], params["b_qkv"], qkv_dtype).reshape(B, HW, 3 * C)

    # Banded neighborhood attention + projection + residual.
    x1 = nat_attention_proj(qkv, bias_tab, x.reshape(B, HW, C),
                            params["w_proj"], params["b_proj"],
                            num_heads=num_heads, scale=scale,
                            H=H, W=W, TR=TR, BAND=BAND, pad=kernel_size // 2)

    # LN2 + MLP + residual.
    out = mlp_residual(x1.reshape(N, C), params["ln2_g"], params["ln2_b"],
                       params["w_fc1"], params["b_fc1"],
                       params["w_fc2"], params["b_fc2"])
    return out.reshape(B, H, W, C)


# ---------------- pure-JAX reference (windowed formulation) for sanity check ----------------
def nat_layer_reference(x, params, num_heads, kernel_size):
    B, H, W, C = x.shape
    hd = C // num_heads
    kk = kernel_size * kernel_size
    scale = hd ** -0.5

    xn = _layernorm(x, params["ln1_g"], params["ln1_b"])
    qkv = xn @ params["w_qkv"] + params["b_qkv"]
    qkv = qkv.reshape(B, H, W, 3, num_heads, hd).transpose(3, 0, 4, 1, 2, 5)
    q, k, v = qkv[0] * scale, qkv[1], qkv[2]

    rows, cols = _window_indices(H, W, kernel_size)
    knb = _gather_neighborhood(k, rows, cols)
    vnb = _gather_neighborhood(v, rows, cols)
    pb_rows = rows - jnp.arange(H)[:, None] + (kernel_size - 1)
    pb_cols = cols - jnp.arange(W)[:, None] + (kernel_size - 1)
    bias = params["rpb"][:, pb_rows[:, None, :, None], pb_cols[None, :, None, :]]

    attn = jnp.einsum("bnijd,bnijxyd->bnijxy", q, knb) + bias[None]
    attn = jax.nn.softmax(attn.reshape(B, num_heads, H, W, kk), axis=-1)
    out = jnp.einsum("bnijk,bnijkd->bnijd", attn, vnb.reshape(B, num_heads, H, W, kk, hd))
    out = out.transpose(0, 2, 3, 1, 4).reshape(B, H, W, C)
    out = out @ params["w_proj"] + params["b_proj"]
    x1 = x + out
    x2 = _layernorm(x1, params["ln2_g"], params["ln2_b"])
    h = jax.nn.gelu(x2 @ params["w_fc1"] + params["b_fc1"], approximate=False)
    y = h @ params["w_fc2"] + params["b_fc2"]
    return x1 + y


if __name__ == "__main__":
    # small shapes consistent with the module; big enough that every grid has >1 tile.
    B, H, W = 2, 16, 16
    dim, num_heads, kernel_size = 32, 4, 7
    hidden = int(dim * 4.0)                                  # mlp_ratio = 4.0

    key = jax.random.PRNGKey(0)
    ks = jax.random.split(key, 12)

    def nrm(k, shape, s=0.02):
        return (s * jax.random.normal(k, shape)).astype(jnp.float32)

    # NOTE: Linear weights stored as (in, out); equivalent to torch's x @ W.T.
    params = dict(
        ln1_g=jnp.ones((dim,), jnp.float32),
        ln1_b=jnp.zeros((dim,), jnp.float32),
        w_qkv=nrm(ks[0], (dim, 3 * dim)),
        b_qkv=nrm(ks[1], (3 * dim,)),
        rpb=nrm(ks[2], (num_heads, 2 * kernel_size - 1, 2 * kernel_size - 1)),
        w_proj=nrm(ks[3], (dim, dim)),
        b_proj=nrm(ks[4], (dim,)),
        ln2_g=jnp.ones((dim,), jnp.float32),
        ln2_b=jnp.zeros((dim,), jnp.float32),
        w_fc1=nrm(ks[5], (dim, hidden)),
        b_fc1=nrm(ks[6], (hidden,)),
        w_fc2=nrm(ks[7], (hidden, dim)),
        b_fc2=nrm(ks[8], (dim,)),
    )
    x = jax.random.normal(ks[9], (B, H, W, dim), jnp.float32)

    # Build the banded bias/mask table ONCE per layer (batch-independent; review item 10).
    bias_tab, _, _ = make_banded_bias(params["rpb"], H, W, kernel_size)
    bias_tab = jax.block_until_ready(bias_tab)

    out = nat_layer_forward(x, params, num_heads, kernel_size, bias_tab=bias_tab)
    out = jax.block_until_ready(out)

    ref = jax.block_until_ready(nat_layer_reference(x, params, num_heads, kernel_size))
    assert out.shape == (B, H, W, dim)
    assert bool(jnp.allclose(out, ref, atol=2e-3, rtol=2e-3)), "mismatch vs pure-JAX reference"

    # TODO(synk): Dropout / attn_drop / DropPath are identity here (p=0.0, eval semantics).
    print("KERNEL_OK")
</pallas_src>

<mosaic_0001>
module attributes {stable_mosaic.version = 11 : i64} {
  func.func @ln_qkv_kernel(%arg0: i32, %arg1: memref<512x32xf32, #tpu.memory_space<vmem>>, %arg2: memref<1x32xf32, #tpu.memory_space<vmem>>, %arg3: memref<1x32xf32, #tpu.memory_space<vmem>>, %arg4: memref<32x96xf32, #tpu.memory_space<vmem>>, %arg5: memref<1x96xf32, #tpu.memory_space<vmem>>, %arg6: memref<512x96xbf16, #tpu.memory_space<vmem>>) attributes {dimension_semantics = [#tpu.dimension_semantics<parallel>], iteration_bounds = array<i64: 1>, scalar_prefetch = 0 : i64, scratch_operands = 0 : i64, tpu.core_type = #tpu.core_type<tc>, window_params = [{transform_indices = @transform_0, window_bounds = array<i64: 512, 32>}, {pipeline_mode = #tpu.pipeline_mode<synchronous>, transform_indices = @transform_1, window_bounds = array<i64: 1, 32>}, {pipeline_mode = #tpu.pipeline_mode<synchronous>, transform_indices = @transform_2, window_bounds = array<i64: 1, 32>}, {pipeline_mode = #tpu.pipeline_mode<synchronous>, transform_indices = @transform_3, window_bounds = array<i64: 32, 96>}, {pipeline_mode = #tpu.pipeline_mode<synchronous>, transform_indices = @transform_4, window_bounds = array<i64: 1, 96>}, {transform_indices = @transform_5, window_bounds = array<i64: 512, 96>}]} {
    %c0 = arith.constant 0 : index
    %c0_0 = arith.constant 0 : index
    %0 = vector.load %arg1[%c0, %c0_0] : memref<512x32xf32, #tpu.memory_space<vmem>>, vector<512x32xf32>
    %c0_1 = arith.constant 0 : index
    %c0_2 = arith.constant 0 : index
    %1 = vector.load %arg2[%c0_1, %c0_2] : memref<1x32xf32, #tpu.memory_space<vmem>>, vector<1x32xf32>
    %c0_3 = arith.constant 0 : index
    %c0_4 = arith.constant 0 : index
    %2 = vector.load %arg3[%c0_3, %c0_4] : memref<1x32xf32, #tpu.memory_space<vmem>>, vector<1x32xf32>
    %cst = arith.constant dense<0.000000e+00> : vector<512xf32>
    %3 = vector.multi_reduction <add>, %0, %cst [1] : vector<512x32xf32> to vector<512xf32>
    %4 = vector.shape_cast %3 : vector<512xf32> to vector<512x1xf32>
    %cst_5 = arith.constant 3.200000e+01 : f32
    %5 = vector.broadcast %cst_5 : f32 to vector<512x1xf32>
    %6 = arith.divf %4, %5 : vector<512x1xf32>
    %7 = vector.broadcast %6 : vector<512x1xf32> to vector<512x32xf32>
    %8 = arith.subf %0, %7 : vector<512x32xf32>
    %9 = arith.mulf %8, %8 : vector<512x32xf32>
    %cst_6 = arith.constant dense<0.000000e+00> : vector<512xf32>
    %10 = vector.multi_reduction <add>, %9, %cst_6 [1] : vector<512x32xf32> to vector<512xf32>
    %11 = vector.shape_cast %10 : vector<512xf32> to vector<512x1xf32>
    %cst_7 = arith.constant 3.200000e+01 : f32
    %12 = vector.broadcast %cst_7 : f32 to vector<512x1xf32>
    %13 = arith.divf %11, %12 : vector<512x1xf32>
    %14 = vector.broadcast %6 : vector<512x1xf32> to vector<512x32xf32>
    %15 = arith.subf %0, %14 : vector<512x32xf32>
    %cst_8 = arith.constant 9.99999974E-6 : f32
    %16 = vector.broadcast %cst_8 : f32 to vector<512x1xf32>
    %17 = arith.addf %13, %16 : vector<512x1xf32>
    %18 = math.rsqrt %17 : vector<512x1xf32>
    %19 = vector.broadcast %18 : vector<512x1xf32> to vector<512x32xf32>
    %20 = arith.mulf %15, %19 : vector<512x32xf32>
    %21 = vector.broadcast %1 : vector<1x32xf32> to vector<512x32xf32>
    %22 = arith.mulf %20, %21 : vector<512x32xf32>
    %23 = vector.broadcast %2 : vector<1x32xf32> to vector<512x32xf32>
    %24 = arith.addf %22, %23 : vector<512x32xf32>
    %c0_9 = arith.constant 0 : index
    %c0_10 = arith.constant 0 : index
    %25 = vector.load %arg4[%c0_9, %c0_10] : memref<32x96xf32, #tpu.memory_space<vmem>>, vector<32x96xf32>
    %cst_11 = arith.constant dense<0.000000e+00> : vector<512x96xf32>
    %26 = tpu.matmul %24, %25, %cst_11 {dimension_numbers = #tpu.dot_dimension_numbers<[1], [0], [0], [1], [0, 0, 1, 1], [], []>} : vector<512x32xf32>, vector<32x96xf32>, vector<512x96xf32> -> vector<512x96xf32>
    %c0_12 = arith.constant 0 : index
    %c0_13 = arith.constant 0 : index
    %27 = vector.load %arg5[%c0_12, %c0_13] : memref<1x96xf32, #tpu.memory_space<vmem>>, vector<1x96xf32>
    %28 = vector.broadcast %27 : vector<1x96xf32> to vector<512x96xf32>
    %29 = arith.addf %26, %28 : vector<512x96xf32>
    %30 = arith.truncf %29 : vector<512x96xf32> to vector<512x96xbf16>
    %c0_14 = arith.constant 0 : index
    %c0_15 = arith.constant 0 : index
    %31 = vector.load %arg6[%c0_14, %c0_15] : memref<512x96xbf16, #tpu.memory_space<vmem>>, vector<512x96xbf16>
    tpu.vector_store %arg6[%c0_14, %c0_15], %30 {strides = array<i32>} : memref<512x96xbf16, #tpu.memory_space<vmem>>, vector<512x96xbf16>,
    return
  }
  func.func @transform_0(%arg0: i32) -> (i32, i32) {
    %c0_i32 = arith.constant 0 : i32
    %c0_i32_0 = arith.constant 0 : i32
    return %arg0, %c0_i32 : i32, i32
  }
  func.func @transform_1(%arg0: i32) -> (i32, i32) {
    %c0_i32 = arith.constant 0 : i32
    %c0_i32_0 = arith.constant 0 : i32
    %c0_i32_1 = arith.constant 0 : i32
    return %c0_i32, %c0_i32_0 : i32, i32
  }
  func.func @transform_2(%arg0: i32) -> (i32, i32) {
    %c0_i32 = arith.constant 0 : i32
    %c0_i32_0 = arith.constant 0 : i32
    %c0_i32_1 = arith.constant 0 : i32
    return %c0_i32, %c0_i32_0 : i32, i32
  }
  func.func @transform_3(%arg0: i32) -> (i32, i32) {
    %c0_i32 = arith.constant 0 : i32
    %c0_i32_0 = arith.constant 0 : i32
    %c0_i32_1 = arith.constant 0 : i32
    return %c0_i32, %c0_i32_0 : i32, i32
  }
  func.func @transform_4(%arg0: i32) -> (i32, i32) {
    %c0_i32 = arith.constant 0 : i32
    %c0_i32_0 = arith.constant 0 : i32
    %c0_i32_1 = arith.constant 0 : i32
    return %c0_i32, %c0_i32_0 : i32, i32
  }
  func.func @transform_5(%arg0: i32) -> (i32, i32) {
    %c0_i32 = arith.constant 0 : i32
    %c0_i32_0 = arith.constant 0 : i32
    return %arg0, %c0_i32 : i32, i32
  }
}

</mosaic_0001>

<bundles_post_ra>
// kernel: tpu_custom_call.1
= control target key start
LH: loop header
LB: loop body
LE: loop exit
PB: predicated region body
PF: predicated region fallthrough
CT: control target
= control target key end

     0   :  { %vm86_vm0 = vcmask 261120   ;;  %vm1904_vm1 = vcmask 781312   ;;  %s3939_s0 = inlined_call_operand.vmem [shape: f32[512,32], index: 0, kind: input, shape index: {}]   ;;  %s3940_s3 = inlined_call_operand.vmem [shape: f32[32,96], index: 3, kind: input, shape index: {}]   ;;  %s3941_s1 = inlined_call_operand.vmem [shape: f32[1,32], index: 1, kind: input, shape index: {}]   ;;  %s3942_s2 = inlined_call_operand.vmem [shape: f32[1,32], index: 2, kind: input, shape index: {}]   ;;  %s3943_s4 = inlined_call_operand.vmem [shape: f32[1,96], index: 4, kind: input, shape index: {}]   ;;  %s3944_s5 = inlined_call_operand.vmem [shape: bf16[512,96], index: 5, kind: output, shape index: {}]  }
   0x1   :  { %v2515_v0 = vld [vmem:[%s3939_s0] sm:$0xff]  ;;  %v2520_v1 = vld [vmem:[%s3939_s0 + $0x8] sm:$0xff]  ;;  %v2543_v8 = vld [vmem:[%s3939_s0 + $0x10] sm:$0xff] }
   0x2   :  { %v2525_v2 = vld [vmem:[%s3939_s0 + $0x100] sm:$0xff]  ;;  %v87_v3 = vsel %vm86_vm0, %v2515_v0, 0.0  ;;  %v90_v4 = vsel %vm86_vm0, %v2520_v1, 0.0  ;;  %v2534_v5 = vld [vmem:[%s3939_s0 + $0x108] sm:$0xff]  ;;  %v2548_v9 = vld [vmem:[%s3939_s0 + $0x110] sm:$0xff]  ;;  %v93_v10 = vsel %vm86_vm0, %v2543_v8, 0.0 }
   0x3   :  { %88 = vadd.xlane.f32.xlu0 %v87_v3  ;;  %91 = vadd.xlane.f32.xlu1 %v90_v4  ;;  %v183_v6 = vsel %vm86_vm0, %v2525_v2, 0.0  ;;  %v186_v7 = vsel %vm86_vm0, %v2534_v5, 0.0  ;;  %v189_v11 = vsel %vm86_vm0, %v2548_v9, 0.0  ;;  %v2557_v12 = vld [vmem:[%s3939_s0 + $0x18] sm:$0xff]  ;;  %v2571_v16 = vld [vmem:[%s3939_s0 + $0x20] sm:$0xff]  ;;  %v2585_v20 = vld [vmem:[%s3939_s0 + $0x28] sm:$0xff] }
   0x4   :  { %v2562_v13 = vld [vmem:[%s3939_s0 + $0x118] sm:$0xff]  ;;  %v96_v14 = vsel %vm86_vm0, %v2557_v12, 0.0  ;;  %v2576_v17 = vld [vmem:[%s3939_s0 + $0x120] sm:$0xff]  ;;  %v99_v18 = vsel %vm86_vm0, %v2571_v16, 0.0  ;;  %v2590_v21 = vld [vmem:[%s3939_s0 + $0x128] sm:$0xff]  ;;  %v102_v22 = vsel %vm86_vm0, %v2585_v20, 0.0 }
   0x5   :  { %v192_v15 = vsel %vm86_vm0, %v2562_v13, 0.0  ;;  %v195_v19 = vsel %vm86_vm0, %v2576_v17, 0.0  ;;  %v198_v23 = vsel %vm86_vm0, %v2590_v21, 0.0  ;;  %v2599_v24 = vld [vmem:[%s3939_s0 + $0x30] sm:$0xff]  ;;  %v2613_v28 = vld [vmem:[%s3939_s0 + $0x38] sm:$0xff]  ;;  %v2627_v32 = vld [vmem:[%s3939_s0 + $0x40] sm:$0xff] }
   0x6   :  { %v2604_v25 = vld [vmem:[%s3939_s0 + $0x130] sm:$0xff]  ;;  %v105_v26 = vsel %vm86_vm0, %v2599_v24, 0.0  ;;  %v2618_v29 = vld [vmem:[%s3939_s0 + $0x138] sm:$0xff]  ;;  %v108_v30 = vsel %vm86_vm0, %v2613_v28, 0.0  ;;  %v2632_v33 = vld [vmem:[%s3939_s0 + $0x140] sm:$0xff]  ;;  %v111_v34 = vsel %vm86_vm0, %v2627_v32, 0.0 }
   0x7   :  { %184 = vadd.xlane.f32.xlu0 %v183_v6  ;;  %187 = vadd.xlane.f32.xlu1 %v186_v7  ;;  %v201_v27 = vsel %vm86_vm0, %v2604_v25, 0.0  ;;  %v204_v31 = vsel %vm86_vm0, %v2618_v29, 0.0  ;;  %v207_v35 = vsel %vm86_vm0, %v2632_v33, 0.0  ;;  %v2641_v36 = vld [vmem:[%s3939_s0 + $0x48] sm:$0xff]  ;;  %v2655_v40 = vld [vmem:[%s3939_s0 + $0x50] sm:$0xff]  ;;  %v2669_v44 = vld [vmem:[%s3939_s0 + $0x58] sm:$0xff] }
   0x8   :  { %v2646_v37 = vld [vmem:[%s3939_s0 + $0x148] sm:$0xff]  ;;  %v114_v38 = vsel %vm86_vm0, %v2641_v36, 0.0  ;;  %v2660_v41 = vld [vmem:[%s3939_s0 + $0x150] sm:$0xff]  ;;  %v117_v42 = vsel %vm86_vm0, %v2655_v40, 0.0  ;;  %v2674_v45 = vld [vmem:[%s3939_s0 + $0x158] sm:$0xff]  ;;  %v120_v46 = vsel %vm86_vm0, %v2669_v44, 0.0 }
   0x9   :  { %v210_v39 = vsel %vm86_vm0, %v2646_v37, 0.0  ;;  %v213_v43 = vsel %vm86_vm0, %v2660_v41, 0.0  ;;  %v216_v47 = vsel %vm86_vm0, %v2674_v45, 0.0  ;;  %v2683_v48 = vld [vmem:[%s3939_s0 + $0x60] sm:$0xff]  ;;  %v2697_v52 = vld [vmem:[%s3939_s0 + $0x68] sm:$0xff]  ;;  %v2711_v56 = vld [vmem:[%s3939_s0 + $0x70] sm:$0xff] }
   0xa   :  { %v2688_v49 = vld [vmem:[%s3939_s0 + $0x160] sm:$0xff]  ;;  %v123_v50 = vsel %vm86_vm0, %v2683_v48, 0.0  ;;  %v2702_v53 = vld [vmem:[%s3939_s0 + $0x168] sm:$0xff]  ;;  %v126_v54 = vsel %vm86_vm0, %v2697_v52, 0.0  ;;  %v2716_v57 = vld [vmem:[%s3939_s0 + $0x170] sm:$0xff]  ;;  %v129_v58 = vsel %vm86_vm0, %v2711_v56, 0.0 }
   0xb   :  { %94 = vadd.xlane.f32.xlu0 %v93_v10  ;;  %190 = vadd.xlane.f32.xlu1 %v189_v11  ;;  %v219_v51 = vsel %vm86_vm0, %v2688_v49, 0.0  ;;  %v222_v55 = vsel %vm86_vm0, %v2702_v53, 0.0  ;;  %v225_v59 = vsel %vm86_vm0, %v2716_v57, 0.0  ;;  %v2725_v60 = vld [vmem:[%s3939_s0 + $0x78] sm:$0xff]  ;;  %v2739_v3 = vld [vmem:[%s3939_s0 + $0x80] sm:$0xff]  ;;  %v2753_v10 = vld [vmem:[%s3939_s0 + $0x88] sm:$0xff] }
   0xc   :  { %v2730_v61 = vld [vmem:[%s3939_s0 + $0x178] sm:$0xff]  ;;  %v132_v62 = vsel %vm86_vm0, %v2725_v60, 0.0  ;;  %v2744_v4 = vld [vmem:[%s3939_s0 + $0x180] sm:$0xff]  ;;  %v135_v6 = vsel %vm86_vm0, %v2739_v3, 0.0  ;;  %v2758_v11 = vld [vmem:[%s3939_s0 + $0x188] sm:$0xff] }
   0xd   :  { %v228_v63 = vsel %vm86_vm0, %v2730_v61, 0.0  ;;  %v231_v7 = vsel %vm86_vm0, %v2744_v4, 0.0 }
   0xf   :  { %97 = vadd.xlane.f32.xlu0 %v96_v14  ;;  %193 = vadd.xlane.f32.xlu1 %v192_v15  ;;  %v138_v14 = vsel %vm86_vm0, %v2753_v10, 0.0  ;;  %v234_v15 = vsel %vm86_vm0, %v2758_v11, 0.0 }
  0x13   :  { %100 = vadd.xlane.f32.xlu0 %v99_v18  ;;  %196 = vadd.xlane.f32.xlu1 %v195_v19  ;;  %v2767_v18 = vld [vmem:[%s3939_s0 + $0x90] sm:$0xff] }
  0x14   :  { %v2772_v19 = vld [vmem:[%s3939_s0 + $0x190] sm:$0xff] }
  0x17   :  { %103 = vadd.xlane.f32.xlu0 %v102_v22  ;;  %199 = vadd.xlane.f32.xlu1 %v198_v23  ;;  %v141_v22 = vsel %vm86_vm0, %v2767_v18, 0.0  ;;  %v237_v23 = vsel %vm86_vm0, %v2772_v19, 0.0 }
  0x1b   :  { %106 = vadd.xlane.f32.xlu0 %v105_v26  ;;  %202 = vadd.xlane.f32.xlu1 %v201_v27  ;;  %v2781_v26 = vld [vmem:[%s3939_s0 + $0x98] sm:$0xff] }
  0x1c   :  { %v2786_v27 = vld [vmem:[%s3939_s0 + $0x198] sm:$0xff] }
  0x1f   :  { %109 = vadd.xlane.f32.xlu0 %v108_v30  ;;  %205 = vadd.xlane.f32.xlu1 %v204_v31  ;;  %v144_v30 = vsel %vm86_vm0, %v2781_v26, 0.0  ;;  %v240_v31 = vsel %vm86_vm0, %v2786_v27, 0.0 }
  0x23   :  { %112 = vadd.xlane.f32.xlu0 %v111_v34  ;;  %208 = vadd.xlane.f32.xlu1 %v207_v35  ;;  %v2795_v34 = vld [vmem:[%s3939_s0 + $0xa0] sm:$0xff] }
  0x24   :  { %v2800_v35 = vld [vmem:[%s3939_s0 + $0x1a0] sm:$0xff] }
  0x27   :  { %115 = vadd.xlane.f32.xlu0 %v114_v38  ;;  %211 = vadd.xlane.f32.xlu1 %v210_v39  ;;  %v147_v38 = vsel %vm86_vm0, %v2795_v34, 0.0  ;;  %v243_v39 = vsel %vm86_vm0, %v2800_v35, 0.0 }
  0x2b   :  { %118 = vadd.xlane.f32.xlu0 %v117_v42  ;;  %214 = vadd.xlane.f32.xlu1 %v213_v43  ;;  %v2809_v42 = vld [vmem:[%s3939_s0 + $0xa8] sm:$0xff] }
  0x2c   :  { %v2814_v43 = vld [vmem:[%s3939_s0 + $0x1a8] sm:$0xff] }
  0x2f   :  { %121 = vadd.xlane.f32.xlu0 %v120_v46  ;;  %217 = vadd.xlane.f32.xlu1 %v216_v47  ;;  %v150_v46 = vsel %vm86_vm0, %v2809_v42, 0.0  ;;  %v246_v47 = vsel %vm86_vm0, %v2814_v43, 0.0 }
  0x33   :  { %124 = vadd.xlane.f32.xlu0 %v123_v50  ;;  %220 = vadd.xlane.f32.xlu1 %v219_v51  ;;  %v2823_v50 = vld [vmem:[%s3939_s0 + $0xb0] sm:$0xff] }
  0x34   :  { %v2828_v51 = vld [vmem:[%s3939_s0 + $0x1b0] sm:$0xff] }
  0x37   :  { %127 = vadd.xlane.f32.xlu0 %v126_v54  ;;  %223 = vadd.xlane.f32.xlu1 %v222_v55  ;;  %v153_v54 = vsel %vm86_vm0, %v2823_v50, 0.0  ;;  %v249_v55 = vsel %vm86_vm0, %v2828_v51, 0.0 }
  0x3b   :  { %130 = vadd.xlane.f32.xlu0 %v129_v58  ;;  %226 = vadd.xlane.f32.xlu1 %v225_v59  ;;  %v2837_v58 = vld [vmem:[%s3939_s0 + $0xb8] sm:$0xff] }
  0x3c   :  { %v2842_v59 = vld [vmem:[%s3939_s0 + $0x1b8] sm:$0xff] }
  0x3f   :  { %133 = vadd.xlane.f32.xlu0 %v132_v62  ;;  %229 = vadd.xlane.f32.xlu1 %v228_v63  ;;  %v156_v62 = vsel %vm86_vm0, %v2837_v58, 0.0  ;;  %v252_v63 = vsel %vm86_vm0, %v2842_v59, 0.0 }
  0x43   :  { %136 = vadd.xlane.f32.xlu0 %v135_v6  ;;  %232 = vadd.xlane.f32.xlu1 %v231_v7  ;;  %v2851_v6 = vld [vmem:[%s3939_s0 + $0xc0] sm:$0xff] }
  0x44   :  { %v2856_v7 = vld [vmem:[%s3939_s0 + $0x1c0] sm:$0xff] }
  0x47   :  { %139 = vadd.xlane.f32.xlu0 %v138_v14  ;;  %235 = vadd.xlane.f32.xlu1 %v234_v15  ;;  %v159_v14 = vsel %vm86_vm0, %v2851_v6, 0.0  ;;  %v255_v15 = vsel %vm86_vm0, %v2856_v7, 0.0 }
  0x4b   :  { %142 = vadd.xlane.f32.xlu0 %v141_v22  ;;  %238 = vadd.xlane.f32.xlu1 %v237_v23  ;;  %v2865_v22 = vld [vmem:[%s3939_s0 + $0xc8] sm:$0xff] }
  0x4c   :  { %3979 = vst [vmem:[#allocation2_spill] sm:$0xff] %v2865_v22  ;;  %v2870_v23 = vld [vmem:[%s3939_s0 + $0x1c8] sm:$0xff] }
  0x4d   :  { %3980 = vst [vmem:[#allocation3_spill] sm:$0xff] %v2870_v23 }
  0x4f   :  { %145 = vadd.xlane.f32.xlu0 %v144_v30  ;;  %241 = vadd.xlane.f32.xlu1 %v240_v31  ;;  %v162_v30 = vsel %vm86_vm0, %v2865_v22, 0.0  ;;  %v258_v31 = vsel %vm86_vm0, %v2870_v23, 0.0 }
  0x53   :  { %148 = vadd.xlane.f32.xlu0 %v147_v38  ;;  %244 = vadd.xlane.f32.xlu1 %v243_v39  ;;  %v2879_v38 = vld [vmem:[%s3939_s0 + $0xd0] sm:$0xff] }
  0x54   :  { %3981 = vst [vmem:[#allocation4_spill] sm:$0xff] %v2879_v38  ;;  %v2884_v39 = vld [vmem:[%s3939_s0 + $0x1d0] sm:$0xff] }
  0x55   :  { %3982 = vst [vmem:[#allocation5_spill] sm:$0xff] %v2884_v39 }
  0x57   :  { %151 = vadd.xlane.f32.xlu0 %v150_v46  ;;  %247 = vadd.xlane.f32.xlu1 %v246_v47  ;;  %v165_v46 = vsel %vm86_vm0, %v2879_v38, 0.0  ;;  %v261_v47 = vsel %vm86_vm0, %v2884_v39, 0.0 }
  0x5b   :  { %154 = vadd.xlane.f32.xlu0 %v153_v54  ;;  %250 = vadd.xlane.f32.xlu1 %v249_v55  ;;  %v2893_v54 = vld [vmem:[%s3939_s0 + $0xd8] sm:$0xff] }
  0x5c   :  { %3983 = vst [vmem:[#allocation6_spill] sm:$0xff] %v2893_v54  ;;  %v2898_v55 = vld [vmem:[%s3939_s0 + $0x1d8] sm:$0xff] }
  0x5d   :  { %3984 = vst [vmem:[#allocation7_spill] sm:$0xff] %v2898_v55 }
  0x5f   :  { %157 = vadd.xlane.f32.xlu0 %v156_v62  ;;  %253 = vadd.xlane.f32.xlu1 %v252_v63  ;;  %v168_v62 = vsel %vm86_vm0, %v2893_v54, 0.0  ;;  %v264_v63 = vsel %vm86_vm0, %v2898_v55, 0.0 }
  0x63   :  { %160 = vadd.xlane.f32.xlu0 %v159_v14  ;;  %256 = vadd.xlane.f32.xlu1 %v255_v15  ;;  %v2907_v14 = vld [vmem:[%s3939_s0 + $0xe0] sm:$0xff] }
  0x64   :  { %3985 = vst [vmem:[#allocation8_spill] sm:$0xff] %v2907_v14  ;;  %v2912_v15 = vld [vmem:[%s3939_s0 + $0x1e0] sm:$0xff] }
  0x65   :  { %3986 = vst [vmem:[#allocation9_spill] sm:$0xff] %v2912_v15 }
  0x67   :  { %163 = vadd.xlane.f32.xlu0 %v162_v30  ;;  %259 = vadd.xlane.f32.xlu1 %v258_v31  ;;  %v171_v30 = vsel %vm86_vm0, %v2907_v14, 0.0  ;;  %v267_v31 = vsel %vm86_vm0, %v2912_v15, 0.0  ;;  %v2935_v15 = vld [vmem:[%s3939_s0 + $0xf0] sm:$0xff] }
  0x68   :  { %3989 = vst [vmem:[#allocation12_spill] sm:$0xff] %v2935_v15  ;;  %v2940_v14 = vld [vmem:[%s3939_s0 + $0x1f0] sm:$0xff] }
  0x69   :  { %3990 = vst [vmem:[#allocation13_spill] sm:$0xff] %v2940_v14 }
  0x6b   :  { %166 = vadd.xlane.f32.xlu0 %v165_v46  ;;  %262 = vadd.xlane.f32.xlu1 %v261_v47  ;;  %v2921_v46 = vld [vmem:[%s3939_s0 + $0xe8] sm:$0xff] }
  0x6c   :  { %3987 = vst [vmem:[#allocation10_spill] sm:$0xff] %v2921_v46  ;;  %v2926_v47 = vld [vmem:[%s3939_s0 + $0x1e8] sm:$0xff] }
  0x6d   :  { %3988 = vst [vmem:[#allocation11_spill] sm:$0xff] %v2926_v47 }
  0x6f   :  { %169 = vadd.xlane.f32.xlu0 %v168_v62  ;;  %265 = vadd.xlane.f32.xlu1 %v264_v63  ;;  %v174_v62 = vsel %vm86_vm0, %v2921_v46, 0.0  ;;  %v270_v63 = vsel %vm86_vm0, %v2926_v47, 0.0  ;;  %v2949_v47 = vld [vmem:[%s3939_s0 + $0xf8] sm:$0xff] }
  0x70   :  { %3991 = vst [vmem:[#allocation14_spill] sm:$0xff] %v2949_v47  ;;  %v2954_v46 = vld [vmem:[%s3939_s0 + $0x1f8] sm:$0xff] }
  0x73   :  { %172 = vadd.xlane.f32.xlu0 %v171_v30  ;;  %268 = vadd.xlane.f32.xlu1 %v267_v31  ;;  %v177_v30 = vsel %vm86_vm0, %v2935_v15, 0.0  ;;  %v273_v31 = vsel %vm86_vm0, %v2940_v14, 0.0 }
  0x77   :  { %175 = vadd.xlane.f32.xlu0 %v174_v62  ;;  %271 = vadd.xlane.f32.xlu1 %v270_v63  ;;  %v180_v62 = vsel %vm86_vm0, %v2949_v47, 0.0  ;;  %v276_v63 = vsel %vm86_vm0, %v2954_v46, 0.0 }
  0x7b   :  { %178 = vadd.xlane.f32.xlu0 %v177_v30  ;;  %274 = vadd.xlane.f32.xlu1 %v273_v31 }
  0x7f   :  { %181 = vadd.xlane.f32.xlu0 %v180_v62  ;;  %277 = vadd.xlane.f32.xlu1 %v276_v63 }
  0x90   :  { %v89_v14 = vpop.xlane.xlu0 %88  ;;  %v92_v15 = vpop.xlane.xlu1 %91 }
  0x91   :  { %v280_v55 = vmul.f32 0.03125, %v89_v14  ;;  %v281_v54 = vmul.f32 0.03125, %v92_v15 }
  0x93   :  { %v2961_v39 = vsub.f32 %v2515_v0, %v280_v55  ;;  %v2964_v38 = vsub.f32 %v2520_v1, %v281_v54 }
  0x94   :  { %v185_v30 = vpop.xlane.xlu0 %184  ;;  %v188_v31 = vpop.xlane.xlu1 %187 }
  0x95   :  { %3992 = vst [vmem:[#allocation15_spill] sm:$0xff] %v2964_v38  ;;  %v312_v23 = vmul.f32 0.03125, %v185_v30  ;;  %v313_v22 = vmul.f32 0.03125, %v188_v31  ;;  %v408_v47 = vmul.f32 %v2961_v39, %v2961_v39  ;;  %v409_v62 = vmul.f32 %v2964_v38, %v2964_v38 }
  0x97   :  { %v2971_v63 = vsub.f32 %v2525_v2, %v312_v23  ;;  %v2974_v14 = vsub.f32 %v2534_v5, %v313_v22  ;;  %v472_v0 = vsel %vm86_vm0, %v408_v47, 0.0  ;;  %v475_v55 = vsel %vm86_vm0, %v409_v62, 0.0 }
  0x98   :  { %473 = vadd.xlane.f32.xlu0 %v472_v0  ;;  %v95_v1 = vpop.xlane.xlu0 %94  ;;  %v191_v54 = vpop.xlane.xlu1 %190 }
  0x99   :  { %v282_v15 = vmul.f32 0.03125, %v95_v1  ;;  %v314_v30 = vmul.f32 0.03125, %v191_v54  ;;  %v440_v31 = vmul.f32 %v2971_v63, %v2971_v63  ;;  %v441_v38 = vmul.f32 %v2974_v14, %v2974_v14 }
  0x9b   :  { %v2983_v2 = vsub.f32 %v2543_v8, %v282_v15  ;;  %v2986_v5 = vsub.f32 %v2548_v9, %v314_v30  ;;  %v568_v22 = vsel %vm86_vm0, %v440_v31, 0.0  ;;  %v571_v62 = vsel %vm86_vm0, %v441_v38, 0.0 }
  0x9c   :  { %476 = vadd.xlane.f32.xlu0 %v475_v55  ;;  %569 = vadd.xlane.f32.xlu1 %v568_v22  ;;  %v98_v23 = vpop.xlane.xlu0 %97  ;;  %v194_v47 = vpop.xlane.xlu1 %193 }
  0x9d   :  { %v283_v0 = vmul.f32 0.03125, %v98_v23  ;;  %v315_v1 = vmul.f32 0.03125, %v194_v47  ;;  %v410_v54 = vmul.f32 %v2983_v2, %v2983_v2  ;;  %v442_v8 = vmul.f32 %v2986_v5, %v2986_v5 }
  0x9f   :  { %v2995_v15 = vsub.f32 %v2557_v12, %v283_v0  ;;  %v2998_v9 = vsub.f32 %v2562_v13, %v315_v1  ;;  %v478_v55 = vsel %vm86_vm0, %v410_v54, 0.0  ;;  %v574_v31 = vsel %vm86_vm0, %v442_v8, 0.0 }
  0xa0   :  { %572 = vadd.xlane.f32.xlu1 %v571_v62  ;;  %479 = vadd.xlane.f32.xlu0 %v478_v55  ;;  %v101_v30 = vpop.xlane.xlu0 %100  ;;  %v197_v38 = vpop.xlane.xlu1 %196 }
  0xa1   :  { %v284_v22 = vmul.f32 0.03125, %v101_v30  ;;  %v316_v23 = vmul.f32 0.03125, %v197_v38  ;;  %v411_v47 = vmul.f32 %v2995_v15, %v2995_v15  ;;  %v443_v12 = vmul.f32 %v2998_v9, %v2998_v9 }
  0xa3   :  { %v3007_v0 = vsub.f32 %v2571_v16, %v284_v22  ;;  %v3010_v13 = vsub.f32 %v2576_v17, %v316_v23  ;;  %v481_v62 = vsel %vm86_vm0, %v411_v47, 0.0  ;;  %v577_v8 = vsel %vm86_vm0, %v443_v12, 0.0 }
  0xa4   :  { %575 = vadd.xlane.f32.xlu1 %v574_v31  ;;  %482 = vadd.xlane.f32.xlu0 %v481_v62  ;;  %v104_v1 = vpop.xlane.xlu0 %103  ;;  %v200_v54 = vpop.xlane.xlu1 %199 }
  0xa5   :  { %v285_v55 = vmul.f32 0.03125, %v104_v1  ;;  %v317_v30 = vmul.f32 0.03125, %v200_v54  ;;  %v412_v38 = vmul.f32 %v3007_v0, %v3007_v0  ;;  %v444_v16 = vmul.f32 %v3010_v13, %v3010_v13 }
  0xa7   :  { %v3019_v22 = vsub.f32 %v2585_v20, %v285_v55  ;;  %v3022_v17 = vsub.f32 %v2590_v21, %v317_v30  ;;  %v484_v31 = vsel %vm86_vm0, %v412_v38, 0.0  ;;  %v580_v12 = vsel %vm86_vm0, %v444_v16, 0.0 }
  0xa8   :  { %578 = vadd.xlane.f32.xlu1 %v577_v8  ;;  %485 = vadd.xlane.f32.xlu0 %v484_v31  ;;  %v107_v23 = vpop.xlane.xlu0 %106  ;;  %v203_v47 = vpop.xlane.xlu1 %202 }
  0xa9   :  { %v286_v62 = vmul.f32 0.03125, %v107_v23  ;;  %v318_v1 = vmul.f32 0.03125, %v203_v47  ;;  %v413_v54 = vmul.f32 %v3019_v22, %v3019_v22  ;;  %v445_v20 = vmul.f32 %v3022_v17, %v3022_v17 }
  0xab   :  { %v3031_v55 = vsub.f32 %v2599_v24, %v286_v62  ;;  %v3034_v21 = vsub.f32 %v2604_v25, %v318_v1  ;;  %v487_v8 = vsel %vm86_vm0, %v413_v54, 0.0  ;;  %v583_v16 = vsel %vm86_vm0, %v445_v20, 0.0 }
  0xac   :  { %581 = vadd.xlane.f32.xlu1 %v580_v12  ;;  %488 = vadd.xlane.f32.xlu0 %v487_v8  ;;  %v110_v30 = vpop.xlane.xlu0 %109  ;;  %v206_v38 = vpop.xlane.xlu1 %205 }
  0xad   :  { %v287_v31 = vmul.f32 0.03125, %v110_v30  ;;  %v319_v23 = vmul.f32 0.03125, %v206_v38  ;;  %v414_v47 = vmul.f32 %v3031_v55, %v3031_v55  ;;  %v446_v24 = vmul.f32 %v3034_v21, %v3034_v21 }
  0xaf   :  { %v3043_v62 = vsub.f32 %v2613_v28, %v287_v31  ;;  %v3046_v25 = vsub.f32 %v2618_v29, %v319_v23  ;;  %v490_v12 = vsel %vm86_vm0, %v414_v47, 0.0  ;;  %v586_v20 = vsel %vm86_vm0, %v446_v24, 0.0 }
  0xb0   :  { %584 = vadd.xlane.f32.xlu1 %v583_v16  ;;  %491 = vadd.xlane.f32.xlu0 %v490_v12  ;;  %v113_v1 = vpop.xlane.xlu0 %112  ;;  %v209_v54 = vpop.xlane.xlu1 %208 }
  0xb1   :  { %3993 = vst [vmem:[#allocation16_spill] sm:$0xff] %v3046_v25  ;;  %v288_v8 = vmul.f32 0.03125, %v113_v1  ;;  %v320_v30 = vmul.f32 0.03125, %v209_v54  ;;  %v415_v38 = vmul.f32 %v3043_v62, %v3043_v62  ;;  %v447_v28 = vmul.f32 %v3046_v25, %v3046_v25 }
  0xb3   :  { %v3055_v31 = vsub.f32 %v2627_v32, %v288_v8  ;;  %v3058_v29 = vsub.f32 %v2632_v33, %v320_v30  ;;  %v493_v16 = vsel %vm86_vm0, %v415_v38, 0.0  ;;  %v589_v24 = vsel %vm86_vm0, %v447_v28, 0.0  ;;  %v1060_v33 = vld [vmem:[%s3940_s3] sm:$0xff] }
  0xb4   :  { %587 = vadd.xlane.f32.xlu1 %v586_v20  ;;  %494 = vadd.xlane.f32.xlu0 %v493_v16  ;;  %v116_v23 = vpop.xlane.xlu0 %115  ;;  %v212_v47 = vpop.xlane.xlu1 %211  ;;  %v1061_v20 = vld [vmem:[%s3940_s3 + $0x8] sm:$0xff] }
  0xb5   :  { %3994 = vst [vmem:[#allocation17_spill] sm:$0xff] %v3055_v31  ;;  %3995 = vst [vmem:[#allocation18_spill] sm:$0xff] %v3058_v29  ;;  %v289_v12 = vmul.f32 0.03125, %v116_v23  ;;  %v321_v1 = vmul.f32 0.03125, %v212_v47  ;;  %v416_v54 = vmul.f32 %v3055_v31, %v3055_v31  ;;  %v448_v32 = vmul.f32 %v3058_v29, %v3058_v29 }
  0xb6   :  { %v2340_v8 = vpack.c.bf16 %v1061_v20, %v1060_v33 }
  0xb7   :  { %v3073_v30 = vsub.f32 %v2641_v36, %v289_v12  ;;  %v3076_v38 = vsub.f32 %v2646_v37, %v321_v1  ;;  %v496_v28 = vsel %vm86_vm0, %v416_v54, 0.0  ;;  %v592_v47 = vsel %vm86_vm0, %v448_v32, 0.0  ;;  %v1062_v37 = vld [vmem:[%s3940_s3 + $0x10] sm:$0xff] }
  0xb8   :  { %590 = vadd.xlane.f32.xlu1 %v589_v24  ;;  %497 = vadd.xlane.f32.xlu0 %v496_v28  ;;  %v119_v16 = vpop.xlane.xlu0 %118  ;;  %v215_v23 = vpop.xlane.xlu1 %214  ;;  %v1063_v24 = vld [vmem:[%s3940_s3 + $0x18] sm:$0xff] }
  0xb9   :  { %v290_v29 = vmul.f32 0.03125, %v119_v16  ;;  %v322_v31 = vmul.f32 0.03125, %v215_v23  ;;  %v417_v25 = vmul.f32 %v3073_v30, %v3073_v30  ;;  %v449_v36 = vmul.f32 %v3076_v38, %v3076_v38  ;;  %2341 = vmatprep.subr.bf16.mxu0 %v2340_v8  ;;  %2348 = vmatprep.subr.bf16.mxu1 %v2340_v8 }
  0xba   :  { %2343 = vmatpush3.bf16.msra.mxu0 %v2340_v8  ;;  %v2344_v12 = vpack.c.bf16 %v1063_v24, %v1062_v37  ;;  %2350 = vmatpush3.bf16.msra.mxu1 %v2340_v8 }
  0xbb   :  { %v3091_v1 = vsub.f32 %v2655_v40, %v290_v29  ;;  %v3094_v54 = vsub.f32 %v2660_v41, %v322_v31  ;;  %v499_v32 = vsel %vm86_vm0, %v417_v25, 0.0  ;;  %v595_v28 = vsel %vm86_vm0, %v449_v36, 0.0 }
  0xbc   :  { %593 = vadd.xlane.f32.xlu1 %v592_v47  ;;  %500 = vadd.xlane.f32.xlu0 %v499_v32  ;;  %v122_v33 = vpop.xlane.xlu0 %121  ;;  %v218_v20 = vpop.xlane.xlu1 %217 }
  0xbd   :  { %v291_v16 = vmul.f32 0.03125, %v122_v33  ;;  %v323_v23 = vmul.f32 0.03125, %v218_v20  ;;  %v418_v37 = vmul.f32 %v3091_v1, %v3091_v1  ;;  %v450_v40 = vmul.f32 %v3094_v54, %v3094_v54  ;;  %2345 = vmatprep.subr.bf16.mxu0 %v2344_v12  ;;  %2349 = vmatprep.subr.bf16.mxu1 %v2344_v12 }
  0xbe   :  { %2347 = vmatpush3.bf16.msra.mxu0 %v2344_v12  ;;  %2351 = vmatpush3.bf16.msra.mxu1 %v2344_v12 }
  0xbf   :  { %v3103_v41 = vsub.f32 %v2669_v44, %v291_v16  ;;  %v3106_v25 = vsub.f32 %v2674_v45, %v323_v23  ;;  %v502_v31 = vsel %vm86_vm0, %v418_v37, 0.0  ;;  %v598_v47 = vsel %vm86_vm0, %v450_v40, 0.0 }
  0xc0   :  { %596 = vadd.xlane.f32.xlu1 %v595_v28  ;;  %503 = vadd.xlane.f32.xlu0 %v502_v31  ;;  %v125_v29 = vpop.xlane.xlu0 %124  ;;  %v221_v8 = vpop.xlane.xlu1 %220 }
  0xc1   :  { %v292_v36 = vmul.f32 0.03125, %v125_v29  ;;  %v324_v24 = vmul.f32 0.03125, %v221_v8  ;;  %v419_v32 = vmul.f32 %v3103_v41, %v3103_v41  ;;  %v451_v44 = vmul.f32 %v3106_v25, %v3106_v25 }
  0xc3   :  { %v3115_v12 = vsub.f32 %v2683_v48, %v292_v36  ;;  %v3118_v45 = vsub.f32 %v2688_v49, %v324_v24  ;;  %v505_v33 = vsel %vm86_vm0, %v419_v32, 0.0  ;;  %v601_v16 = vsel %vm86_vm0, %v451_v44, 0.0 }
  0xc4   :  { %599 = vadd.xlane.f32.xlu1 %v598_v47  ;;  %506 = vadd.xlane.f32.xlu0 %v505_v33  ;;  %v128_v20 = vpop.xlane.xlu0 %127  ;;  %v224_v28 = vpop.xlane.xlu1 %223 }
  0xc5   :  { %v293_v23 = vmul.f32 0.03125, %v128_v20  ;;  %v325_v37 = vmul.f32 0.03125, %v224_v28  ;;  %v420_v40 = vmul.f32 %v3115_v12, %v3115_v12  ;;  %v452_v48 = vmul.f32 %v3118_v45, %v3118_v45 }
  0xc7   :  { %v3127_v31 = vsub.f32 %v2697_v52, %v293_v23  ;;  %v3130_v49 = vsub.f32 %v2702_v53, %v325_v37  ;;  %v508_v29 = vsel %vm86_vm0, %v420_v40, 0.0  ;;  %v604_v36 = vsel %vm86_vm0, %v452_v48, 0.0 }
  0xc8   :  { %602 = vadd.xlane.f32.xlu1 %v601_v16  ;;  %509 = vadd.xlane.f32.xlu0 %v508_v29  ;;  %v131_v8 = vpop.xlane.xlu0 %130  ;;  %v227_v47 = vpop.xlane.xlu1 %226 }
  0xc9   :  { %v294_v24 = vmul.f32 0.03125, %v131_v8  ;;  %v326_v32 = vmul.f32 0.03125, %v227_v47  ;;  %v421_v44 = vmul.f32 %v3127_v31, %v3127_v31  ;;  %v453_v52 = vmul.f32 %v3130_v49, %v3130_v49 }
  0xcb   :  { %v3139_v33 = vsub.f32 %v2711_v56, %v294_v24  ;;  %v3142_v53 = vsub.f32 %v2716_v57, %v326_v32  ;;  %v511_v20 = vsel %vm86_vm0, %v421_v44, 0.0  ;;  %v607_v23 = vsel %vm86_vm0, %v453_v52, 0.0 }
  0xcc   :  { %605 = vadd.xlane.f32.xlu1 %v604_v36  ;;  %512 = vadd.xlane.f32.xlu0 %v511_v20  ;;  %v134_v28 = vpop.xlane.xlu0 %133  ;;  %v230_v16 = vpop.xlane.xlu1 %229 }
  0xcd   :  { %v295_v37 = vmul.f32 0.03125, %v134_v28  ;;  %v327_v40 = vmul.f32 0.03125, %v230_v16  ;;  %v422_v48 = vmul.f32 %v3139_v33, %v3139_v33  ;;  %v454_v56 = vmul.f32 %v3142_v53, %v3142_v53 }
  0xcf   :  { %v3151_v29 = vsub.f32 %v2725_v60, %v295_v37  ;;  %v3154_v57 = vsub.f32 %v2730_v61, %v327_v40  ;;  %v514_v8 = vsel %vm86_vm0, %v422_v48, 0.0  ;;  %v610_v24 = vsel %vm86_vm0, %v454_v56, 0.0 }
  0xd0   :  { %608 = vadd.xlane.f32.xlu1 %v607_v23  ;;  %515 = vadd.xlane.f32.xlu0 %v514_v8  ;;  %v137_v47 = vpop.xlane.xlu0 %136  ;;  %v233_v36 = vpop.xlane.xlu1 %232 }
  0xd1   :  { %v296_v32 = vmul.f32 0.03125, %v137_v47  ;;  %v328_v44 = vmul.f32 0.03125, %v233_v36  ;;  %v423_v52 = vmul.f32 %v3151_v29, %v3151_v29  ;;  %v455_v60 = vmul.f32 %v3154_v57, %v3154_v57 }
  0xd3   :  { %v3163_v20 = vsub.f32 %v2739_v3, %v296_v32  ;;  %v3166_v61 = vsub.f32 %v2744_v4, %v328_v44  ;;  %v517_v28 = vsel %vm86_vm0, %v423_v52, 0.0  ;;  %v613_v37 = vsel %vm86_vm0, %v455_v60, 0.0 }
  0xd4   :  { %611 = vadd.xlane.f32.xlu1 %v610_v24  ;;  %518 = vadd.xlane.f32.xlu0 %v517_v28  ;;  %v140_v16 = vpop.xlane.xlu0 %139  ;;  %v236_v23 = vpop.xlane.xlu1 %235 }
  0xd5   :  { %v297_v40 = vmul.f32 0.03125, %v140_v16  ;;  %v329_v48 = vmul.f32 0.03125, %v236_v23  ;;  %v424_v56 = vmul.f32 %v3163_v20, %v3163_v20  ;;  %v456_v3 = vmul.f32 %v3166_v61, %v3166_v61 }
  0xd7   :  { %v3175_v8 = vsub.f32 %v2753_v10, %v297_v40  ;;  %v3178_v4 = vsub.f32 %v2758_v11, %v329_v48  ;;  %v520_v47 = vsel %vm86_vm0, %v424_v56, 0.0  ;;  %v616_v32 = vsel %vm86_vm0, %v456_v3, 0.0 }
  0xd8   :  { %614 = vadd.xlane.f32.xlu1 %v613_v37  ;;  %521 = vadd.xlane.f32.xlu0 %v520_v47  ;;  %v143_v36 = vpop.xlane.xlu0 %142  ;;  %v239_v24 = vpop.xlane.xlu1 %238 }
  0xd9   :  { %v298_v44 = vmul.f32 0.03125, %v143_v36  ;;  %v330_v52 = vmul.f32 0.03125, %v239_v24  ;;  %v425_v60 = vmul.f32 %v3175_v8, %v3175_v8  ;;  %v457_v10 = vmul.f32 %v3178_v4, %v3178_v4 }
  0xdb   :  { %v3187_v28 = vsub.f32 %v2767_v18, %v298_v44  ;;  %v3190_v11 = vsub.f32 %v2772_v19, %v330_v52  ;;  %v523_v16 = vsel %vm86_vm0, %v425_v60, 0.0  ;;  %v619_v40 = vsel %vm86_vm0, %v457_v10, 0.0 }
  0xdc   :  { %617 = vadd.xlane.f32.xlu1 %v616_v32  ;;  %524 = vadd.xlane.f32.xlu0 %v523_v16  ;;  %v146_v23 = vpop.xlane.xlu0 %145  ;;  %v242_v37 = vpop.xlane.xlu1 %241 }
  0xdd   :  { %v299_v48 = vmul.f32 0.03125, %v146_v23  ;;  %v331_v56 = vmul.f32 0.03125, %v242_v37  ;;  %v426_v3 = vmul.f32 %v3187_v28, %v3187_v28  ;;  %v458_v18 = vmul.f32 %v3190_v11, %v3190_v11 }
  0xdf   :  { %v3199_v47 = vsub.f32 %v2781_v26, %v299_v48  ;;  %v3202_v19 = vsub.f32 %v2786_v27, %v331_v56  ;;  %v526_v36 = vsel %vm86_vm0, %v426_v3, 0.0  ;;  %v622_v44 = vsel %vm86_vm0, %v458_v18, 0.0 }
  0xe0   :  { %620 = vadd.xlane.f32.xlu1 %v619_v40  ;;  %527 = vadd.xlane.f32.xlu0 %v526_v36  ;;  %v149_v24 = vpop.xlane.xlu0 %148  ;;  %v245_v32 = vpop.xlane.xlu1 %244 }
  0xe1   :  { %v300_v52 = vmul.f32 0.03125, %v149_v24  ;;  %v332_v60 = vmul.f32 0.03125, %v245_v32  ;;  %v427_v10 = vmul.f32 %v3199_v47, %v3199_v47  ;;  %v459_v26 = vmul.f32 %v3202_v19, %v3202_v19 }
  0xe3   :  { %v3211_v16 = vsub.f32 %v2795_v34, %v300_v52  ;;  %v3214_v27 = vsub.f32 %v2800_v35, %v332_v60  ;;  %v529_v23 = vsel %vm86_vm0, %v427_v10, 0.0  ;;  %v625_v48 = vsel %vm86_vm0, %v459_v26, 0.0 }
  0xe4   :  { %623 = vadd.xlane.f32.xlu1 %v622_v44  ;;  %530 = vadd.xlane.f32.xlu0 %v529_v23  ;;  %v152_v37 = vpop.xlane.xlu0 %151  ;;  %v248_v40 = vpop.xlane.xlu1 %247 }
  0xe5   :  { %v301_v56 = vmul.f32 0.03125, %v152_v37  ;;  %v333_v3 = vmul.f32 0.03125, %v248_v40  ;;  %v428_v18 = vmul.f32 %v3211_v16, %v3211_v16  ;;  %v460_v34 = vmul.f32 %v3214_v27, %v3214_v27 }
  0xe7   :  { %v3223_v36 = vsub.f32 %v2809_v42, %v301_v56  ;;  %v3226_v35 = vsub.f32 %v2814_v43, %v333_v3  ;;  %v532_v24 = vsel %vm86_vm0, %v428_v18, 0.0  ;;  %v628_v52 = vsel %vm86_vm0, %v460_v34, 0.0 }
  0xe8   :  { %626 = vadd.xlane.f32.xlu1 %v625_v48  ;;  %533 = vadd.xlane.f32.xlu0 %v532_v24  ;;  %v155_v32 = vpop.xlane.xlu0 %154  ;;  %v251_v44 = vpop.xlane.xlu1 %250 }
  0xe9   :  { %v302_v60 = vmul.f32 0.03125, %v155_v32  ;;  %v334_v10 = vmul.f32 0.03125, %v251_v44  ;;  %v429_v26 = vmul.f32 %v3223_v36, %v3223_v36  ;;  %v461_v42 = vmul.f32 %v3226_v35, %v3226_v35 }
  0xeb   :  { %v3235_v23 = vsub.f32 %v2823_v50, %v302_v60  ;;  %v3238_v43 = vsub.f32 %v2828_v51, %v334_v10  ;;  %v535_v37 = vsel %vm86_vm0, %v429_v26, 0.0  ;;  %v631_v56 = vsel %vm86_vm0, %v461_v42, 0.0 }
  0xec   :  { %629 = vadd.xlane.f32.xlu1 %v628_v52  ;;  %536 = vadd.xlane.f32.xlu0 %v535_v37  ;;  %v158_v40 = vpop.xlane.xlu0 %157  ;;  %v254_v48 = vpop.xlane.xlu1 %253 }
  0xed   :  { %v303_v3 = vmul.f32 0.03125, %v158_v40  ;;  %v335_v18 = vmul.f32 0.03125, %v254_v48  ;;  %v430_v34 = vmul.f32 %v3235_v23, %v3235_v23  ;;  %v462_v50 = vmul.f32 %v3238_v43, %v3238_v43 }
  0xef   :  { %v3247_v24 = vsub.f32 %v2837_v58, %v303_v3  ;;  %v3250_v51 = vsub.f32 %v2842_v59, %v335_v18  ;;  %v538_v32 = vsel %vm86_vm0, %v430_v34, 0.0  ;;  %v634_v60 = vsel %vm86_vm0, %v462_v50, 0.0 }
  0xf0   :  { %632 = vadd.xlane.f32.xlu1 %v631_v56  ;;  %539 = vadd.xlane.f32.xlu0 %v538_v32  ;;  %v161_v44 = vpop.xlane.xlu0 %160  ;;  %v257_v52 = vpop.xlane.xlu1 %256  ;;  %v3999_v32 = vld [vmem:[#allocation2_spill] sm:$0xff] }
  0xf1   :  { %3996 = vst [vmem:[#allocation19_spill] sm:$0xff] %v3250_v51  ;;  %v304_v10 = vmul.f32 0.03125, %v161_v44  ;;  %v336_v26 = vmul.f32 0.03125, %v257_v52  ;;  %v431_v42 = vmul.f32 %v3247_v24, %v3247_v24  ;;  %v463_v58 = vmul.f32 %v3250_v51, %v3250_v51 }
  0xf3   :  { %v3259_v37 = vsub.f32 %v2851_v6, %v304_v10  ;;  %v3262_v59 = vsub.f32 %v2856_v7, %v336_v26  ;;  %v541_v40 = vsel %vm86_vm0, %v431_v42, 0.0  ;;  %v637_v3 = vsel %vm86_vm0, %v463_v58, 0.0  ;;  %v4001_v7 = vld [vmem:[#allocation3_spill] sm:$0xff] }
  0xf4   :  { %635 = vadd.xlane.f32.xlu1 %v634_v60  ;;  %542 = vadd.xlane.f32.xlu0 %v541_v40  ;;  %v164_v48 = vpop.xlane.xlu0 %163  ;;  %v260_v56 = vpop.xlane.xlu1 %259 }
  0xf5   :  { %3997 = vst [vmem:[#allocation20_spill] sm:$0xff] %v3259_v37  ;;  %3998 = vst [vmem:[#allocation21_spill] sm:$0xff] %v3262_v59  ;;  %v305_v18 = vmul.f32 0.03125, %v164_v48  ;;  %v337_v34 = vmul.f32 0.03125, %v260_v56  ;;  %v432_v50 = vmul.f32 %v3259_v37, %v3259_v37  ;;  %v464_v6 = vmul.f32 %v3262_v59, %v3262_v59 }
  0xf7   :  { %v3271_v44 = vsub.f32 %v3999_v32, %v305_v18  ;;  %v3274_v52 = vsub.f32 %v4001_v7, %v337_v34  ;;  %v544_v60 = vsel %vm86_vm0, %v432_v50, 0.0  ;;  %v640_v42 = vsel %vm86_vm0, %v464_v6, 0.0  ;;  %v4003_v18 = vld [vmem:[#allocation4_spill] sm:$0xff]  ;;  %v4005_v34 = vld [vmem:[#allocation5_spill] sm:$0xff] }
  0xf8   :  { %638 = vadd.xlane.f32.xlu1 %v637_v3  ;;  %545 = vadd.xlane.f32.xlu0 %v544_v60  ;;  %v167_v10 = vpop.xlane.xlu0 %166  ;;  %v263_v26 = vpop.xlane.xlu1 %262 }
  0xf9   :  { %4000 = vst [vmem:[#allocation2_spill] sm:$0xff] %v3271_v44  ;;  %4002 = vst [vmem:[#allocation3_spill] sm:$0xff] %v3274_v52  ;;  %v306_v58 = vmul.f32 0.03125, %v167_v10  ;;  %v338_v40 = vmul.f32 0.03125, %v263_v26  ;;  %v433_v48 = vmul.f32 %v3271_v44, %v3271_v44  ;;  %v465_v56 = vmul.f32 %v3274_v52, %v3274_v52 }
  0xfb   :  { %v3283_v32 = vsub.f32 %v4003_v18, %v306_v58  ;;  %v3286_v7 = vsub.f32 %v4005_v34, %v338_v40  ;;  %v547_v3 = vsel %vm86_vm0, %v433_v48, 0.0  ;;  %v643_v60 = vsel %vm86_vm0, %v465_v56, 0.0  ;;  %v4007_v18 = vld [vmem:[#allocation6_spill] sm:$0xff]  ;;  %v4009_v40 = vld [vmem:[#allocation7_spill] sm:$0xff] }
  0xfc   :  { %641 = vadd.xlane.f32.xlu1 %v640_v42  ;;  %548 = vadd.xlane.f32.xlu0 %v547_v3  ;;  %v170_v50 = vpop.xlane.xlu0 %169  ;;  %v266_v6 = vpop.xlane.xlu1 %265 }
  0xfd   :  { %4004 = vst [vmem:[#allocation4_spill] sm:$0xff] %v3283_v32  ;;  %4006 = vst [vmem:[#allocation5_spill] sm:$0xff] %v3286_v7  ;;  %v307_v10 = vmul.f32 0.03125, %v170_v50  ;;  %v339_v26 = vmul.f32 0.03125, %v266_v6  ;;  %v434_v44 = vmul.f32 %v3283_v32, %v3283_v32  ;;  %v466_v58 = vmul.f32 %v3286_v7, %v3286_v7 }
  0xff   :  { %v3295_v52 = vsub.f32 %v4007_v18, %v307_v10  ;;  %v3298_v34 = vsub.f32 %v4009_v40, %v339_v26  ;;  %v550_v42 = vsel %vm86_vm0, %v434_v44, 0.0  ;;  %v646_v3 = vsel %vm86_vm0, %v466_v58, 0.0  ;;  %v4011_v18 = vld [vmem:[#allocation8_spill] sm:$0xff]  ;;  %v4013_v26 = vld [vmem:[#allocation9_spill] sm:$0xff] }
 0x100   :  { %644 = vadd.xlane.f32.xlu1 %v643_v60  ;;  %551 = vadd.xlane.f32.xlu0 %v550_v42  ;;  %v173_v48 = vpop.xlane.xlu0 %172  ;;  %v269_v56 = vpop.xlane.xlu1 %268 }
 0x101   :  { %4008 = vst [vmem:[#allocation6_spill] sm:$0xff] %v3295_v52  ;;  %4010 = vst [vmem:[#allocation7_spill] sm:$0xff] %v3298_v34  ;;  %v308_v50 = vmul.f32 0.03125, %v173_v48  ;;  %v340_v6 = vmul.f32 0.03125, %v269_v56  ;;  %v435_v32 = vmul.f32 %v3295_v52, %v3295_v52  ;;  %v467_v10 = vmul.f32 %v3298_v34, %v3298_v34 }
 0x103   :  { %v3307_v7 = vsub.f32 %v4011_v18, %v308_v50  ;;  %v3310_v40 = vsub.f32 %v4013_v26, %v340_v6  ;;  %v553_v44 = vsel %vm86_vm0, %v435_v32, 0.0  ;;  %v649_v42 = vsel %vm86_vm0, %v467_v10, 0.0  ;;  %v4015_v18 = vld [vmem:[#allocation10_spill] sm:$0xff]  ;;  %v4017_v6 = vld [vmem:[#allocation11_spill] sm:$0xff] }
 0x104   :  { %647 = vadd.xlane.f32.xlu1 %v646_v3  ;;  %554 = vadd.xlane.f32.xlu0 %v553_v44  ;;  %v176_v60 = vpop.xlane.xlu0 %175  ;;  %v272_v58 = vpop.xlane.xlu1 %271 }
 0x105   :  { %4012 = vst [vmem:[#allocation8_spill] sm:$0xff] %v3307_v7  ;;  %4014 = vst [vmem:[#allocation9_spill] sm:$0xff] %v3310_v40  ;;  %v309_v48 = vmul.f32 0.03125, %v176_v60  ;;  %v341_v56 = vmul.f32 0.03125, %v272_v58  ;;  %v436_v52 = vmul.f32 %v3307_v7, %v3307_v7  ;;  %v468_v50 = vmul.f32 %v3310_v40, %v3310_v40 }
 0x107   :  { %v3319_v34 = vsub.f32 %v4015_v18, %v309_v48  ;;  %v3322_v26 = vsub.f32 %v4017_v6, %v341_v56  ;;  %v556_v32 = vsel %vm86_vm0, %v436_v52, 0.0  ;;  %v652_v44 = vsel %vm86_vm0, %v468_v50, 0.0  ;;  %v4019_v18 = vld [vmem:[#allocation12_spill] sm:$0xff]  ;;  %v4021_v56 = vld [vmem:[#allocation13_spill] sm:$0xff] }
 0x108   :  { %650 = vadd.xlane.f32.xlu1 %v649_v42  ;;  %557 = vadd.xlane.f32.xlu0 %v556_v32  ;;  %v179_v3 = vpop.xlane.xlu0 %178  ;;  %v275_v10 = vpop.xlane.xlu1 %274 }
 0x109   :  { %4016 = vst [vmem:[#allocation10_spill] sm:$0xff] %v3319_v34  ;;  %4018 = vst [vmem:[#allocation11_spill] sm:$0xff] %v3322_v26  ;;  %v310_v60 = vmul.f32 0.03125, %v179_v3  ;;  %v342_v58 = vmul.f32 0.03125, %v275_v10  ;;  %v437_v7 = vmul.f32 %v3319_v34, %v3319_v34  ;;  %v469_v48 = vmul.f32 %v3322_v26, %v3322_v26 }
 0x10b   :  { %v3331_v40 = vsub.f32 %v4019_v18, %v310_v60  ;;  %v3334_v6 = vsub.f32 %v4021_v56, %v342_v58  ;;  %v559_v52 = vsel %vm86_vm0, %v437_v7, 0.0  ;;  %v655_v32 = vsel %vm86_vm0, %v469_v48, 0.0  ;;  %v4023_v18 = vld [vmem:[#allocation14_spill] sm:$0xff] }
 0x10c   :  { %653 = vadd.xlane.f32.xlu1 %v652_v44  ;;  %560 = vadd.xlane.f32.xlu0 %v559_v52  ;;  %v182_v42 = vpop.xlane.xlu0 %181  ;;  %v278_v50 = vpop.xlane.xlu1 %277 }
 0x10d   :  { %4020 = vst [vmem:[#allocation12_spill] sm:$0xff] %v3331_v40  ;;  %4022 = vst [vmem:[#allocation13_spill] sm:$0xff] %v3334_v6  ;;  %v311_v3 = vmul.f32 0.03125, %v182_v42  ;;  %v343_v10 = vmul.f32 0.03125, %v278_v50  ;;  %v438_v34 = vmul.f32 %v3331_v40, %v3331_v40  ;;  %v470_v60 = vmul.f32 %v3334_v6, %v3334_v6 }
 0x10f   :  { %v3343_v26 = vsub.f32 %v4023_v18, %v311_v3  ;;  %v3346_v58 = vsub.f32 %v2954_v46, %v343_v10  ;;  %v562_v7 = vsel %vm86_vm0, %v438_v34, 0.0  ;;  %v658_v44 = vsel %vm86_vm0, %v470_v60, 0.0 }
 0x110   :  { %656 = vadd.xlane.f32.xlu1 %v655_v32  ;;  %563 = vadd.xlane.f32.xlu0 %v562_v7 }
 0x111   :  { %4024 = vst [vmem:[#allocation14_spill] sm:$0xff] %v3343_v26  ;;  %4025 = vst [vmem:[#allocation22_spill] sm:$0xff] %v3346_v58  ;;  %v439_v48 = vmul.f32 %v3343_v26, %v3343_v26  ;;  %v471_v56 = vmul.f32 %v3346_v58, %v3346_v58 }
 0x113   :  { %v565_v52 = vsel %vm86_vm0, %v439_v48, 0.0  ;;  %v661_v42 = vsel %vm86_vm0, %v471_v56, 0.0 }
 0x114   :  { %659 = vadd.xlane.f32.xlu1 %v658_v44  ;;  %566 = vadd.xlane.f32.xlu0 %v565_v52 }
 0x118   :  { %662 = vadd.xlane.f32.xlu1 %v661_v42 }
 0x125   :  { %v474_v46 = vpop.xlane.xlu0 %473 }
 0x126   :  { %v664_v50 = vmul.f32 0.03125, %v474_v46 }
 0x128   :  { %v728_v34 = vadd.f32 1e-05, %v664_v50 }
 0x129   :  { %v570_v32 = vpop.xlane.xlu1 %569  ;;  %v477_v3 = vpop.xlane.xlu0 %476 }
 0x12a   :  { %2352 = vrsqrt.f32 %v728_v34  ;;  %v696_v10 = vmul.f32 0.03125, %v570_v32  ;;  %v665_v60 = vmul.f32 0.03125, %v477_v3  ;;  %v3359_v3 = vld [vmem:[%s3941_s1] ss:$0 sm:$0xff] }
 0x12c   :  { %v760_v18 = vadd.f32 1e-05, %v696_v10  ;;  %v729_v7 = vadd.f32 1e-05, %v665_v60 }
 0x12d   :  { %v573_v26 = vpop.xlane.xlu1 %572  ;;  %v480_v6 = vpop.xlane.xlu0 %479 }
 0x12e   :  { %2354 = vrsqrt.f32 %v760_v18  ;;  %v697_v58 = vmul.f32 0.03125, %v573_v26  ;;  %v666_v48 = vmul.f32 0.03125, %v480_v6  ;;  %v3365_v18 = vld [vmem:[%s3942_s2] ss:$0 sm:$0xff] }
 0x12f   :  { %2356 = vrsqrt.f32 %v729_v7 }
 0x130   :  { %v761_v44 = vadd.f32 1e-05, %v697_v58  ;;  %v730_v52 = vadd.f32 1e-05, %v666_v48 }
 0x131   :  { %v576_v56 = vpop.xlane.xlu1 %575  ;;  %v483_v42 = vpop.xlane.xlu0 %482 }
 0x132   :  { %2358 = vrsqrt.f32 %v761_v44  ;;  %v698_v46 = vmul.f32 0.03125, %v576_v56  ;;  %v667_v50 = vmul.f32 0.03125, %v483_v42 }
 0x133   :  { %2360 = vrsqrt.f32 %v730_v52 }
 0x134   :  { %v2353_v40 = vpop.eup %2352  ;;  %v762_v34 = vadd.f32 1e-05, %v698_v46  ;;  %v731_v32 = vadd.f32 1e-05, %v667_v50 }
 0x135   :  { %v579_v10 = vpop.xlane.xlu1 %578  ;;  %v486_v26 = vpop.xlane.xlu0 %485  ;;  %v856_v6 = vmul.f32 %v2353_v40, %v2961_v39 }
 0x136   :  { %2362 = vrsqrt.f32 %v762_v34  ;;  %v699_v58 = vmul.f32 0.03125, %v579_v10  ;;  %v668_v60 = vmul.f32 0.03125, %v486_v26  ;;  %v4026_v10 = vld [vmem:[#allocation15_spill] sm:$0xff] }
 0x137   :  { %2364 = vrsqrt.f32 %v731_v32  ;;  %v926_v7 = vmul.f32 %v3359_v3, %v856_v6 }
 0x138   :  { %v2355_v48 = vpop.eup %2354  ;;  %v763_v44 = vadd.f32 1e-05, %v699_v58  ;;  %v732_v52 = vadd.f32 1e-05, %v668_v60 }
 0x139   :  { %v2357_v56 = vpop.eup %2356  ;;  %v582_v42 = vpop.xlane.xlu1 %581  ;;  %v996_v50 = vadd.f32 %v3365_v18, %v926_v7  ;;  %v888_v39 = vmul.f32 %v2355_v48, %v2971_v63 }
 0x13a   :  { %v489_v46 = vpop.xlane.xlu0 %488  ;;  %2366 = vrsqrt.f32 %v763_v44  ;;  %v700_v40 = vmul.f32 0.03125, %v582_v42  ;;  %v857_v26 = vmul.f32 %v2357_v56, %v4026_v10 }
 0x13b   :  { %v669_v34 = vmul.f32 0.03125, %v489_v46  ;;  %2368 = vrsqrt.f32 %v732_v52  ;;  %2244 = vmatprep.mubr.msk.f32.mxu0 %vm86_vm0, %v996_v50  ;;  %v958_v32 = vmul.f32 %v3359_v3, %v888_v39 }
 0x13c   :  { %v2359_v6 = vpop.eup %2358  ;;  %v764_v58 = vadd.f32 1e-05, %v700_v40  ;;  %v927_v59 = vmul.f32 %v3359_v3, %v857_v26 }
 0x13d   :  { %v733_v60 = vadd.f32 1e-05, %v669_v34  ;;  %v2361_v37 = vpop.eup %2360  ;;  %v585_v51 = vpop.xlane.xlu1 %584  ;;  %v1028_v63 = vadd.f32 %v3365_v18, %v958_v32  ;;  %v889_v48 = vmul.f32 %v2359_v6, %v2974_v14 }
 0x13e   :  { %v492_v7 = vpop.xlane.xlu0 %491  ;;  %2370 = vrsqrt.f32 %v764_v58  ;;  %v701_v44 = vmul.f32 0.03125, %v585_v51  ;;  %v997_v52 = vadd.f32 %v3365_v18, %v927_v59  ;;  %v858_v42 = vmul.f32 %v2361_v37, %v2983_v2 }
 0x13f   :  { %v670_v56 = vmul.f32 0.03125, %v492_v7  ;;  %2372 = vrsqrt.f32 %v733_v60  ;;  %2292 = vmatprep.mubr.msk.f32.mxu1 %vm86_vm0, %v1028_v63  ;;  %v959_v46 = vmul.f32 %v3359_v3, %v889_v48 }
 0x140   :  { %v2363_v50 = vpop.eup %2362  ;;  %v765_v39 = vadd.f32 1e-05, %v701_v44  ;;  %2245 = vmatmul.mubr.msk.f32.vlgmr.msra.gmra.mrb[0].mxu0 %vm86_vm0, %v997_v52  ;;  %v928_v51 = vmul.f32 %v3359_v3, %v858_v42 }
 0x141   :  { %v734_v40 = vadd.f32 1e-05, %v670_v56  ;;  %v2365_v34 = vpop.eup %2364  ;;  %v588_v10 = vpop.xlane.xlu1 %587  ;;  %v1029_v26 = vadd.f32 %v3365_v18, %v959_v46  ;;  %v890_v59 = vmul.f32 %v2363_v50, %v2986_v5 }
 0x142   :  { %v495_v14 = vpop.xlane.xlu0 %494  ;;  %2374 = vrsqrt.f32 %v765_v39  ;;  %v702_v32 = vmul.f32 0.03125, %v588_v10  ;;  %v859_v2 = vmul.f32 %v2365_v34, %v2995_v15  ;;  %v998_v37 = vadd.f32 %v3365_v18, %v928_v51 }
 0x143   :  { %v671_v6 = vmul.f32 0.03125, %v495_v14  ;;  %2376 = vrsqrt.f32 %v734_v40  ;;  %2293 = vmatmul.mubr.msk.f32.vlgmr.msra.gmra.mrb[0].mxu1 %vm86_vm0, %v1029_v26  ;;  %v960_v58 = vmul.f32 %v3359_v3, %v890_v59 }
 0x144   :  { %v2367_v60 = vpop.eup %2366  ;;  %v766_v7 = vadd.f32 1e-05, %v702_v32  ;;  %v929_v48 = vmul.f32 %v3359_v3, %v859_v2  ;;  %2247 = vmatprep.mubr.msk.f32.mxu0 %vm86_vm0, %v998_v37 }
 0x145   :  { %v735_v63 = vadd.f32 1e-05, %v671_v6  ;;  %v2369_v44 = vpop.eup %2368  ;;  %v591_v5 = vpop.xlane.xlu1 %590  ;;  %v1030_v52 = vadd.f32 %v3365_v18, %v960_v58  ;;  %v891_v15 = vmul.f32 %v2367_v60, %v2998_v9 }
 0x146   :  { %v498_v56 = vpop.xlane.xlu0 %497  ;;  %2378 = vrsqrt.f32 %v766_v7  ;;  %v703_v42 = vmul.f32 0.03125, %v591_v5  ;;  %v999_v50 = vadd.f32 %v3365_v18, %v929_v48  ;;  %v860_v39 = vmul.f32 %v2369_v44, %v3007_v0 }
 0x147   :  { %v672_v46 = vmul.f32 0.03125, %v498_v56  ;;  %2380 = vrsqrt.f32 %v735_v63  ;;  %2295 = vmatprep.mubr.msk.f32.mxu1 %vm86_vm0, %v1030_v52  ;;  %v961_v40 = vmul.f32 %v3359_v3, %v891_v15 }
 0x148   :  { %v2371_v34 = vpop.eup %2370  ;;  %v767_v10 = vadd.f32 1e-05, %v703_v42  ;;  %2248 = vmatmul.mubr.msk.f32.gmra.mrb[2].mxu0 %vm86_vm0, %v999_v50  ;;  %v930_v59 = vmul.f32 %v3359_v3, %v860_v39 }
 0x149   :  { %v736_v14 = vadd.f32 1e-05, %v672_v46  ;;  %v2373_v51 = vpop.eup %2372  ;;  %v594_v26 = vpop.xlane.xlu1 %593  ;;  %v1031_v32 = vadd.f32 %v3365_v18, %v961_v40  ;;  %v892_v6 = vmul.f32 %v2371_v34, %v3010_v13 }
 0x14a   :  { %v501_v9 = vpop.xlane.xlu0 %500  ;;  %2382 = vrsqrt.f32 %v767_v10  ;;  %v704_v2 = vmul.f32 0.03125, %v594_v26  ;;  %v861_v0 = vmul.f32 %v2373_v51, %v3019_v22  ;;  %v1000_v58 = vadd.f32 %v3365_v18, %v930_v59 }
 0x14b   :  { %v673_v37 = vmul.f32 0.03125, %v501_v9  ;;  %2384 = vrsqrt.f32 %v736_v14  ;;  %2296 = vmatmul.mubr.msk.f32.gmra.mrb[2].mxu1 %vm86_vm0, %v1031_v32  ;;  %v962_v60 = vmul.f32 %v3359_v3, %v892_v6 }
 0x14c   :  { %v2375_v7 = vpop.eup %2374  ;;  %v768_v63 = vadd.f32 1e-05, %v704_v2  ;;  %v931_v44 = vmul.f32 %v3359_v3, %v861_v0  ;;  %2250 = vmatprep.mubr.msk.f32.mxu0 %vm86_vm0, %v1000_v58 }
 0x14d   :  { %v737_v48 = vadd.f32 1e-05, %v673_v37  ;;  %v2377_v5 = vpop.eup %2376  ;;  %v597_v13 = vpop.xlane.xlu1 %596  ;;  %v1032_v52 = vadd.f32 %v3365_v18, %v962_v60  ;;  %v893_v22 = vmul.f32 %v2375_v7, %v3022_v17 }
 0x14e   :  { %v504_v56 = vpop.xlane.xlu0 %503  ;;  %2386 = vrsqrt.f32 %v768_v63  ;;  %v705_v15 = vmul.f32 0.03125, %v597_v13  ;;  %v1001_v46 = vadd.f32 %v3365_v18, %v931_v44  ;;  %v862_v50 = vmul.f32 %v2377_v5, %v3031_v55 }
 0x14f   :  { %v674_v42 = vmul.f32 0.03125, %v504_v56  ;;  %2388 = vrsqrt.f32 %v737_v48  ;;  %2298 = vmatprep.mubr.msk.f32.mxu1 %vm86_vm0, %v1032_v52  ;;  %v963_v39 = vmul.f32 %v3359_v3, %v893_v22  ;;  %v4028_v22 = vld [vmem:[#allocation17_spill] sm:$0xff] }
 0x150   :  { %v2379_v40 = vpop.eup %2378  ;;  %v769_v34 = vadd.f32 1e-05, %v705_v15  ;;  %2251 = vmatmul.mubr.msk.f32.gmra.mrb[4].mxu0 %vm86_vm0, %v1001_v46  ;;  %v932_v26 = vmul.f32 %v3359_v3, %v862_v50 }
 0x151   :  { %v738_v10 = vadd.f32 1e-05, %v674_v42  ;;  %v2381_v14 = vpop.eup %2380  ;;  %v600_v51 = vpop.xlane.xlu1 %599  ;;  %v1033_v9 = vadd.f32 %v3365_v18, %v963_v39  ;;  %v894_v59 = vmul.f32 %v2379_v40, %v3034_v21 }
 0x152   :  { %v507_v17 = vpop.xlane.xlu0 %506  ;;  %2390 = vrsqrt.f32 %v769_v34  ;;  %v706_v32 = vmul.f32 0.03125, %v600_v51  ;;  %v863_v55 = vmul.f32 %v2381_v14, %v3043_v62  ;;  %v1002_v2 = vadd.f32 %v3365_v18, %v932_v26  ;;  %v4027_v62 = vld [vmem:[#allocation16_spill] sm:$0xff] }
 0x153   :  { %v675_v6 = vmul.f32 0.03125, %v507_v17  ;;  %2392 = vrsqrt.f32 %v738_v10  ;;  %2299 = vmatmul.mubr.msk.f32.gmra.mrb[4].mxu1 %vm86_vm0, %v1033_v9  ;;  %v964_v37 = vmul.f32 %v3359_v3, %v894_v59  ;;  %v4029_v17 = vld [vmem:[#allocation18_spill] sm:$0xff] }
 0x154   :  { %v2383_v0 = vpop.eup %2382  ;;  %v770_v58 = vadd.f32 1e-05, %v706_v32  ;;  %v933_v7 = vmul.f32 %v3359_v3, %v863_v55  ;;  %2253 = vmatprep.mubr.msk.f32.mxu0 %vm86_vm0, %v1002_v2 }
 0x155   :  { %v739_v60 = vadd.f32 1e-05, %v675_v6  ;;  %v2385_v63 = vpop.eup %2384  ;;  %v603_v21 = vpop.xlane.xlu1 %602  ;;  %v1034_v44 = vadd.f32 %v3365_v18, %v964_v37  ;;  %v895_v5 = vmul.f32 %v2383_v0, %v4027_v62 }
 0x156   :  { %v510_v48 = vpop.xlane.xlu0 %509  ;;  %2394 = vrsqrt.f32 %v770_v58  ;;  %v707_v13 = vmul.f32 0.03125, %v603_v21  ;;  %v1003_v52 = vadd.f32 %v3365_v18, %v933_v7  ;;  %v864_v15 = vmul.f32 %v2385_v63, %v4028_v22 }
 0x157   :  { %v676_v56 = vmul.f32 0.03125, %v510_v48  ;;  %2396 = vrsqrt.f32 %v739_v60  ;;  %2301 = vmatprep.mubr.msk.f32.mxu1 %vm86_vm0, %v1034_v44  ;;  %v965_v42 = vmul.f32 %v3359_v3, %v895_v5 }
 0x158   :  { %v2387_v46 = vpop.eup %2386  ;;  %v771_v50 = vadd.f32 1e-05, %v707_v13  ;;  %2254 = vmatmul.mubr.msk.f32.gmra.mrb[6].mxu0 %vm86_vm0, %v1003_v52  ;;  %v934_v14 = vmul.f32 %v3359_v3, %v864_v15 }
 0x159   :  { %v740_v39 = vadd.f32 1e-05, %v676_v56  ;;  %v2389_v40 = vpop.eup %2388  ;;  %v606_v34 = vpop.xlane.xlu1 %605  ;;  %v1035_v51 = vadd.f32 %v3365_v18, %v965_v42  ;;  %v896_v26 = vmul.f32 %v2387_v46, %v4029_v17 }
 0x15a   :  { %v513_v10 = vpop.xlane.xlu0 %512  ;;  %2398 = vrsqrt.f32 %v771_v50  ;;  %v708_v9 = vmul.f32 0.03125, %v606_v34  ;;  %v865_v32 = vmul.f32 %v2389_v40, %v3073_v30  ;;  %v1004_v6 = vadd.f32 %v3365_v18, %v934_v14 }
 0x15b   :  { %v677_v59 = vmul.f32 0.03125, %v513_v10  ;;  %2400 = vrsqrt.f32 %v740_v39  ;;  %2302 = vmatmul.mubr.msk.f32.gmra.mrb[6].mxu1 %vm86_vm0, %v1035_v51  ;;  %v966_v55 = vmul.f32 %v3359_v3, %v896_v26 }
 0x15c   :  { %v2391_v2 = vpop.eup %2390  ;;  %v772_v37 = vadd.f32 1e-05, %v708_v9  ;;  %v935_v58 = vmul.f32 %v3359_v3, %v865_v32  ;;  %2256 = vmatprep.mubr.msk.f32.mxu0 %vm86_vm0, %v1004_v6 }
 0x15d   :  { %v741_v0 = vadd.f32 1e-05, %v677_v59  ;;  %v2393_v60 = vpop.eup %2392  ;;  %v609_v7 = vpop.xlane.xlu1 %608  ;;  %v1036_v21 = vadd.f32 %v3365_v18, %v966_v55  ;;  %v897_v30 = vmul.f32 %v2391_v2, %v3076_v38 }
 0x15e   :  { %v516_v63 = vpop.xlane.xlu0 %515  ;;  %2402 = vrsqrt.f32 %v772_v37  ;;  %v709_v48 = vmul.f32 0.03125, %v609_v7  ;;  %v1005_v62 = vadd.f32 %v3365_v18, %v935_v58  ;;  %v866_v5 = vmul.f32 %v2393_v60, %v3091_v1 }
 0x15f   :  { %v678_v44 = vmul.f32 0.03125, %v516_v63  ;;  %2404 = vrsqrt.f32 %v741_v0  ;;  %2304 = vmatprep.mubr.msk.f32.mxu1 %vm86_vm0, %v1036_v21  ;;  %v967_v13 = vmul.f32 %v3359_v3, %v897_v30 }
 0x160   :  { %v2395_v56 = vpop.eup %2394  ;;  %v773_v52 = vadd.f32 1e-05, %v709_v48  ;;  %2257 = vmatmul.mubr.msk.f32.gmra.mrb[8].mxu0 %vm86_vm0, %v1005_v62  ;;  %v936_v46 = vmul.f32 %v3359_v3, %v866_v5 }
 0x161   :  { %v742_v22 = vadd.f32 1e-05, %v678_v44  ;;  %v2397_v15 = vpop.eup %2396  ;;  %v612_v42 = vpop.xlane.xlu1 %611  ;;  %v1037_v50 = vadd.f32 %v3365_v18, %v967_v13  ;;  %v898_v39 = vmul.f32 %v2395_v56, %v3094_v54 }
 0x162   :  { %v519_v38 = vpop.xlane.xlu0 %518  ;;  %2406 = vrsqrt.f32 %v773_v52  ;;  %v710_v40 = vmul.f32 0.03125, %v612_v42  ;;  %v867_v1 = vmul.f32 %v2397_v15, %v3103_v41  ;;  %v1006_v10 = vadd.f32 %v3365_v18, %v936_v46 }
 0x163   :  { %v679_v34 = vmul.f32 0.03125, %v519_v38  ;;  %2408 = vrsqrt.f32 %v742_v22  ;;  %2305 = vmatmul.mubr.msk.f32.gmra.mrb[8].mxu1 %vm86_vm0, %v1037_v50  ;;  %v968_v14 = vmul.f32 %v3359_v3, %v898_v39 }
 0x164   :  { %v2399_v51 = vpop.eup %2398  ;;  %v774_v17 = vadd.f32 1e-05, %v710_v40  ;;  %v937_v9 = vmul.f32 %v3359_v3, %v867_v1  ;;  %2259 = vmatprep.mubr.msk.f32.mxu0 %vm86_vm0, %v1006_v10 }
 0x165   :  { %v743_v26 = vadd.f32 1e-05, %v679_v34  ;;  %v2401_v59 = vpop.eup %2400  ;;  %v615_v54 = vpop.xlane.xlu1 %614  ;;  %v1038_v6 = vadd.f32 %v3365_v18, %v968_v14  ;;  %v899_v41 = vmul.f32 %v2399_v51, %v3106_v25 }
 0x166   :  { %v522_v32 = vpop.xlane.xlu0 %521  ;;  %2410 = vrsqrt.f32 %v774_v17  ;;  %v711_v55 = vmul.f32 0.03125, %v615_v54  ;;  %v1007_v37 = vadd.f32 %v3365_v18, %v937_v9  ;;  %v868_v0 = vmul.f32 %v2401_v59, %v3115_v12 }
 0x167   :  { %v680_v2 = vmul.f32 0.03125, %v522_v32  ;;  %2412 = vrsqrt.f32 %v743_v26  ;;  %2307 = vmatprep.mubr.msk.f32.mxu1 %vm86_vm0, %v1038_v6  ;;  %v969_v58 = vmul.f32 %v3359_v3, %v899_v41 }
 0x168   :  { %v2403_v60 = vpop.eup %2402  ;;  %v775_v7 = vadd.f32 1e-05, %v711_v55  ;;  %2260 = vmatmul.mubr.msk.f32.gmra.mrb[10].mxu0 %vm86_vm0, %v1007_v37  ;;  %v938_v48 = vmul.f32 %v3359_v3, %v868_v0 }
 0x169   :  { %v744_v63 = vadd.f32 1e-05, %v680_v2  ;;  %v2405_v21 = vpop.eup %2404  ;;  %v618_v30 = vpop.xlane.xlu1 %617  ;;  %v1039_v44 = vadd.f32 %v3365_v18, %v969_v58  ;;  %v900_v62 = vmul.f32 %v2403_v60, %v3118_v45 }
 0x16a   :  { %v525_v25 = vpop.xlane.xlu0 %524  ;;  %2414 = vrsqrt.f32 %v775_v7  ;;  %v712_v5 = vmul.f32 0.03125, %v618_v30  ;;  %v869_v12 = vmul.f32 %v2405_v21, %v3127_v31  ;;  %v1008_v56 = vadd.f32 %v3365_v18, %v938_v48 }
 0x16b   :  { %v681_v13 = vmul.f32 0.03125, %v525_v25  ;;  %2416 = vrsqrt.f32 %v744_v63  ;;  %2308 = vmatmul.mubr.msk.f32.gmra.mrb[10].mxu1 %vm86_vm0, %v1039_v44  ;;  %v970_v52 = vmul.f32 %v3359_v3, %v900_v62 }
 0x16c   :  { %v2407_v22 = vpop.eup %2406  ;;  %v776_v15 = vadd.f32 1e-05, %v712_v5  ;;  %v939_v38 = vmul.f32 %v3359_v3, %v869_v12  ;;  %2262 = vmatprep.mubr.msk.f32.mxu0 %vm86_vm0, %v1008_v56 }
 0x16d   :  { %v745_v42 = vadd.f32 1e-05, %v681_v13  ;;  %v2409_v46 = vpop.eup %2408  ;;  %v621_v45 = vpop.xlane.xlu1 %620  ;;  %v1040_v39 = vadd.f32 %v3365_v18, %v970_v52  ;;  %v901_v31 = vmul.f32 %v2407_v22, %v3130_v49 }
 0x16e   :  { %v528_v50 = vpop.xlane.xlu0 %527  ;;  %2418 = vrsqrt.f32 %v776_v15  ;;  %v713_v40 = vmul.f32 0.03125, %v621_v45  ;;  %v1009_v1 = vadd.f32 %v3365_v18, %v939_v38  ;;  %v870_v10 = vmul.f32 %v2409_v46, %v3139_v33 }
 0x16f   :  { %v682_v34 = vmul.f32 0.03125, %v528_v50  ;;  %2420 = vrsqrt.f32 %v745_v42  ;;  %2310 = vmatprep.mubr.msk.f32.mxu1 %vm86_vm0, %v1040_v39  ;;  %v971_v14 = vmul.f32 %v3359_v3, %v901_v31 }
 0x170   :  { %v2411_v51 = vpop.eup %2410  ;;  %v777_v17 = vadd.f32 1e-05, %v713_v40  ;;  %2263 = vmatmul.mubr.msk.f32.gmra.mrb[12].mxu0 %vm86_vm0, %v1009_v1  ;;  %v940_v54 = vmul.f32 %v3359_v3, %v870_v10 }
 0x171   :  { %v746_v26 = vadd.f32 1e-05, %v682_v34  ;;  %v2413_v9 = vpop.eup %2412  ;;  %v624_v59 = vpop.xlane.xlu1 %623  ;;  %v1041_v32 = vadd.f32 %v3365_v18, %v971_v14  ;;  %v902_v6 = vmul.f32 %v2411_v51, %v3142_v53 }
 0x172   :  { %v531_v49 = vpop.xlane.xlu0 %530  ;;  %2422 = vrsqrt.f32 %v777_v17  ;;  %v714_v41 = vmul.f32 0.03125, %v624_v59  ;;  %v871_v33 = vmul.f32 %v2413_v9, %v3151_v29  ;;  %v1010_v2 = vadd.f32 %v3365_v18, %v940_v54 }
 0x173   :  { %v683_v55 = vmul.f32 0.03125, %v531_v49  ;;  %2424 = vrsqrt.f32 %v746_v26  ;;  %2311 = vmatmul.mubr.msk.f32.gmra.mrb[12].mxu1 %vm86_vm0, %v1041_v32  ;;  %v972_v37 = vmul.f32 %v3359_v3, %v902_v6 }
 0x174   :  { %v2415_v0 = vpop.eup %2414  ;;  %v778_v58 = vadd.f32 1e-05, %v714_v41  ;;  %v941_v7 = vmul.f32 %v3359_v3, %v871_v33  ;;  %2265 = vmatprep.mubr.msk.f32.mxu0 %vm86_vm0, %v1010_v2 }
 0x175   :  { %v747_v60 = vadd.f32 1e-05, %v683_v55  ;;  %v2417_v63 = vpop.eup %2416  ;;  %v627_v53 = vpop.xlane.xlu1 %626  ;;  %v1042_v30 = vadd.f32 %v3365_v18, %v972_v37  ;;  %v903_v29 = vmul.f32 %v2415_v0, %v3154_v57 }
 0x176   :  { %v534_v21 = vpop.xlane.xlu0 %533  ;;  %2426 = vrsqrt.f32 %v778_v58  ;;  %v715_v25 = vmul.f32 0.03125, %v627_v53  ;;  %v1011_v44 = vadd.f32 %v3365_v18, %v941_v7  ;;  %v872_v62 = vmul.f32 %v2417_v63, %v3163_v20 }
 0x177   :  { %v684_v48 = vmul.f32 0.03125, %v534_v21  ;;  %2428 = vrsqrt.f32 %v747_v60  ;;  %2313 = vmatprep.mubr.msk.f32.mxu1 %vm86_vm0, %v1042_v30  ;;  %v973_v5 = vmul.f32 %v3359_v3, %v903_v29 }
 0x178   :  { %v2419_v13 = vpop.eup %2418  ;;  %v779_v12 = vadd.f32 1e-05, %v715_v25  ;;  %2266 = vmatmul.mubr.msk.f32.gmra.mrb[14].mxu0 %vm86_vm0, %v1011_v44  ;;  %v942_v15 = vmul.f32 %v3359_v3, %v872_v62 }
 0x179   :  { %v748_v56 = vadd.f32 1e-05, %v684_v48  ;;  %v2421_v52 = vpop.eup %2420  ;;  %v630_v22 = vpop.xlane.xlu1 %629  ;;  %v1043_v42 = vadd.f32 %v3365_v18, %v973_v5  ;;  %v904_v38 = vmul.f32 %v2419_v13, %v3166_v61 }
 0x17a   :  { %v537_v57 = vpop.xlane.xlu0 %536  ;;  %2430 = vrsqrt.f32 %v779_v12  ;;  %v716_v46 = vmul.f32 0.03125, %v630_v22  ;;  %v873_v20 = vmul.f32 %v2421_v52, %v3175_v8  ;;  %v1012_v50 = vadd.f32 %v3365_v18, %v942_v15 }
 0x17b   :  { %v685_v45 = vmul.f32 0.03125, %v537_v57  ;;  %2432 = vrsqrt.f32 %v748_v56  ;;  %2314 = vmatmul.mubr.msk.f32.gmra.mrb[14].mxu1 %vm86_vm0, %v1043_v42  ;;  %v974_v39 = vmul.f32 %v3359_v3, %v904_v38 }
 0x17c   :  { %v2423_v31 = vpop.eup %2422  ;;  %v780_v40 = vadd.f32 1e-05, %v716_v46  ;;  %v943_v1 = vmul.f32 %v3359_v3, %v873_v20  ;;  %2268 = vmatprep.mubr.msk.f32.mxu0 %vm86_vm0, %v1012_v50 }
 0x17d   :  { %v749_v34 = vadd.f32 1e-05, %v685_v45  ;;  %v2425_v10 = vpop.eup %2424  ;;  %v633_v61 = vpop.xlane.xlu1 %632  ;;  %v1044_v51 = vadd.f32 %v3365_v18, %v974_v39  ;;  %v905_v8 = vmul.f32 %v2423_v31, %v3178_v4 }
 0x17e   :  { %v540_v14 = vpop.xlane.xlu0 %539  ;;  %2434 = vrsqrt.f32 %v780_v40  ;;  %v717_v17 = vmul.f32 0.03125, %v633_v61  ;;  %v1013_v9 = vadd.f32 %v3365_v18, %v943_v1  ;;  %v874_v59 = vmul.f32 %v2425_v10, %v3187_v28 }
 0x17f   :  { %v686_v26 = vmul.f32 0.03125, %v540_v14  ;;  %2436 = vrsqrt.f32 %v749_v34  ;;  %2316 = vmatprep.mubr.msk.f32.mxu1 %vm86_vm0, %v1044_v51  ;;  %v975_v49 = vmul.f32 %v3359_v3, %v905_v8 }
 0x180   :  { %v2427_v54 = vpop.eup %2426  ;;  %v781_v32 = vadd.f32 1e-05, %v717_v17  ;;  %2269 = vmatmul.mubr.msk.f32.gmra.mrb[16].mxu0 %vm86_vm0, %v1013_v9  ;;  %v944_v33 = vmul.f32 %v3359_v3, %v874_v59 }
 0x181   :  { %v750_v6 = vadd.f32 1e-05, %v686_v26  ;;  %v2429_v41 = vpop.eup %2428  ;;  %v636_v55 = vpop.xlane.xlu1 %635  ;;  %v1045_v2 = vadd.f32 %v3365_v18, %v975_v49  ;;  %v906_v37 = vmul.f32 %v2427_v54, %v3190_v11 }
 0x182   :  { %v543_v4 = vpop.xlane.xlu0 %542  ;;  %2438 = vrsqrt.f32 %v781_v32  ;;  %v718_v0 = vmul.f32 0.03125, %v636_v55  ;;  %v875_v28 = vmul.f32 %v2429_v41, %v3199_v47  ;;  %v1014_v60 = vadd.f32 %v3365_v18, %v944_v33 }
 0x183   :  { %v687_v58 = vmul.f32 0.03125, %v543_v4  ;;  %2440 = vrsqrt.f32 %v750_v6  ;;  %2317 = vmatmul.mubr.msk.f32.gmra.mrb[16].mxu1 %vm86_vm0, %v1045_v2  ;;  %v976_v7 = vmul.f32 %v3359_v3, %v906_v37 }
 0x184   :  { %v2431_v63 = vpop.eup %2430  ;;  %v782_v53 = vadd.f32 1e-05, %v718_v0  ;;  %v945_v30 = vmul.f32 %v3359_v3, %v875_v28  ;;  %2271 = vmatprep.mubr.msk.f32.mxu0 %vm86_vm0, %v1014_v60 }
 0x185   :  { %v751_v21 = vadd.f32 1e-05, %v687_v58  ;;  %v2433_v29 = vpop.eup %2432  ;;  %v639_v11 = vpop.xlane.xlu1 %638  ;;  %v1046_v48 = vadd.f32 %v3365_v18, %v976_v7  ;;  %v907_v47 = vmul.f32 %v2431_v63, %v3202_v19 }
 0x186   :  { %v546_v25 = vpop.xlane.xlu0 %545  ;;  %2442 = vrsqrt.f32 %v782_v53  ;;  %v719_v44 = vmul.f32 0.03125, %v639_v11  ;;  %v1015_v5 = vadd.f32 %v3365_v18, %v945_v30  ;;  %v876_v13 = vmul.f32 %v2433_v29, %v3211_v16 }
 0x187   :  { %v688_v62 = vmul.f32 0.03125, %v546_v25  ;;  %2444 = vrsqrt.f32 %v751_v21  ;;  %2319 = vmatprep.mubr.msk.f32.mxu1 %vm86_vm0, %v1046_v48  ;;  %v977_v12 = vmul.f32 %v3359_v3, %v907_v47  ;;  %v4031_v48 = vld [vmem:[#allocation20_spill] sm:$0xff] }
 0x188   :  { %v2435_v56 = vpop.eup %2434  ;;  %v783_v52 = vadd.f32 1e-05, %v719_v44  ;;  %2272 = vmatmul.mubr.msk.f32.gmra.mrb[18].mxu0 %vm86_vm0, %v1015_v5  ;;  %v946_v42 = vmul.f32 %v3359_v3, %v876_v13 }
 0x189   :  { %v752_v22 = vadd.f32 1e-05, %v688_v62  ;;  %v2437_v57 = vpop.eup %2436  ;;  %v642_v15 = vpop.xlane.xlu1 %641  ;;  %v1047_v38 = vadd.f32 %v3365_v18, %v977_v12  ;;  %v908_v46 = vmul.f32 %v2435_v56, %v3214_v27 }
 0x18a   :  { %v549_v19 = vpop.xlane.xlu0 %548  ;;  %2446 = vrsqrt.f32 %v783_v52  ;;  %v720_v45 = vmul.f32 0.03125, %v642_v15  ;;  %v877_v16 = vmul.f32 %v2437_v57, %v3223_v36  ;;  %v1016_v50 = vadd.f32 %v3365_v18, %v946_v42  ;;  %v4032_v15 = vld [vmem:[#allocation21_spill] sm:$0xff] }
 0x18b   :  { %v689_v20 = vmul.f32 0.03125, %v549_v19  ;;  %2448 = vrsqrt.f32 %v752_v22  ;;  %2320 = vmatmul.mubr.msk.f32.gmra.mrb[18].mxu1 %vm86_vm0, %v1047_v38  ;;  %v978_v39 = vmul.f32 %v3359_v3, %v908_v46  ;;  %v4033_v46 = vld [vmem:[#allocation2_spill] sm:$0xff] }
 0x18c   :  { %v2439_v31 = vpop.eup %2438  ;;  %v784_v40 = vadd.f32 1e-05, %v720_v45  ;;  %v947_v1 = vmul.f32 %v3359_v3, %v877_v16  ;;  %2274 = vmatprep.mubr.msk.f32.mxu0 %vm86_vm0, %v1016_v50 }
 0x18d   :  { %v753_v34 = vadd.f32 1e-05, %v689_v20  ;;  %v2441_v10 = vpop.eup %2440  ;;  %v645_v27 = vpop.xlane.xlu1 %644  ;;  %v1048_v14 = vadd.f32 %v3365_v18, %v978_v39  ;;  %v909_v36 = vmul.f32 %v2439_v31, %v3226_v35 }
 0x18e   :  { %v552_v61 = vpop.xlane.xlu0 %551  ;;  %2450 = vrsqrt.f32 %v784_v40  ;;  %v721_v51 = vmul.f32 0.03125, %v645_v27  ;;  %v1017_v17 = vadd.f32 %v3365_v18, %v947_v1  ;;  %v878_v26 = vmul.f32 %v2441_v10, %v3235_v23 }
 0x18f   :  { %v690_v8 = vmul.f32 0.03125, %v552_v61  ;;  %2452 = vrsqrt.f32 %v753_v34  ;;  %2322 = vmatprep.mubr.msk.f32.mxu1 %vm86_vm0, %v1048_v14  ;;  %v979_v9 = vmul.f32 %v3359_v3, %v909_v36  ;;  %v4034_v61 = vld [vmem:[#allocation3_spill] sm:$0xff] }
 0x190   :  { %v2443_v59 = vpop.eup %2442  ;;  %v785_v49 = vadd.f32 1e-05, %v721_v51  ;;  %2275 = vmatmul.mubr.msk.f32.gmra.mrb[20].mxu0 %vm86_vm0, %v1017_v17  ;;  %v948_v41 = vmul.f32 %v3359_v3, %v878_v26  ;;  %v4035_v17 = vld [vmem:[#allocation4_spill] sm:$0xff] }
 0x191   :  { %v754_v54 = vadd.f32 1e-05, %v690_v8  ;;  %v2445_v32 = vpop.eup %2444  ;;  %v648_v6 = vpop.xlane.xlu1 %647  ;;  %v1049_v55 = vadd.f32 %v3365_v18, %v979_v9  ;;  %v910_v4 = vmul.f32 %v2443_v59, %v3238_v43 }
 0x192   :  { %v555_v35 = vpop.xlane.xlu0 %554  ;;  %2454 = vrsqrt.f32 %v785_v49  ;;  %v722_v33 = vmul.f32 0.03125, %v648_v6  ;;  %v879_v23 = vmul.f32 %v2445_v32, %v3247_v24  ;;  %v1018_v37 = vadd.f32 %v3365_v18, %v948_v41  ;;  %v4030_v24 = vld [vmem:[#allocation19_spill] sm:$0xff] }
 0x193   :  { %v691_v2 = vmul.f32 0.03125, %v555_v35  ;;  %2456 = vrsqrt.f32 %v754_v54  ;;  %2323 = vmatmul.mubr.msk.f32.gmra.mrb[20].mxu1 %vm86_vm0, %v1049_v55  ;;  %v980_v0 = vmul.f32 %v3359_v3, %v910_v4  ;;  %v4036_v4 = vld [vmem:[#allocation5_spill] sm:$0xff] }
 0x194   :  { %v2447_v58 = vpop.eup %2446  ;;  %v786_v28 = vadd.f32 1e-05, %v722_v33  ;;  %v949_v7 = vmul.f32 %v3359_v3, %v879_v23  ;;  %2277 = vmatprep.mubr.msk.f32.mxu0 %vm86_vm0, %v1018_v37  ;;  %v4037_v37 = vld [vmem:[#allocation6_spill] sm:$0xff] }
 0x195   :  { %v755_v60 = vadd.f32 1e-05, %v691_v2  ;;  %v2449_v63 = vpop.eup %2448  ;;  %v651_v43 = vpop.xlane.xlu1 %650  ;;  %v1050_v21 = vadd.f32 %v3365_v18, %v980_v0  ;;  %v911_v30 = vmul.f32 %v2447_v58, %v4030_v24 }
 0x196   :  { %v558_v53 = vpop.xlane.xlu0 %557  ;;  %2458 = vrsqrt.f32 %v786_v28  ;;  %v723_v29 = vmul.f32 0.03125, %v651_v43  ;;  %v1019_v25 = vadd.f32 %v3365_v18, %v949_v7  ;;  %v880_v47 = vmul.f32 %v2449_v63, %v4031_v48  ;;  %v4039_v48 = vld [vmem:[#allocation8_spill] sm:$0xff] }
 0x197   :  { %v692_v11 = vmul.f32 0.03125, %v558_v53  ;;  %2460 = vrsqrt.f32 %v755_v60  ;;  %2325 = vmatprep.mubr.msk.f32.mxu1 %vm86_vm0, %v1050_v21  ;;  %v981_v44 = vmul.f32 %v3359_v3, %v911_v30  ;;  %v4038_v30 = vld [vmem:[#allocation7_spill] sm:$0xff] }
 0x198   :  { %v2451_v62 = vpop.eup %2450  ;;  %v787_v5 = vadd.f32 1e-05, %v723_v29  ;;  %2278 = vmatmul.mubr.msk.f32.gmra.mrb[22].mxu0 %vm86_vm0, %v1019_v25  ;;  %v950_v22 = vmul.f32 %v3359_v3, %v880_v47 }
 0x199   :  { %v756_v13 = vadd.f32 1e-05, %v692_v11  ;;  %v2453_v12 = vpop.eup %2452  ;;  %v654_v56 = vpop.xlane.xlu1 %653  ;;  %v1051_v57 = vadd.f32 %v3365_v18, %v981_v44  ;;  %v912_v19 = vmul.f32 %v2451_v62, %v4032_v15  ;;  %v4041_v15 = vld [vmem:[#allocation10_spill] sm:$0xff] }
 0x19a   :  { %v561_v52 = vpop.xlane.xlu0 %560  ;;  %2462 = vrsqrt.f32 %v787_v5  ;;  %v724_v42 = vmul.f32 0.03125, %v654_v56  ;;  %v881_v45 = vmul.f32 %v2453_v12, %v4033_v46  ;;  %v1020_v20 = vadd.f32 %v3365_v18, %v950_v22 }
 0x19b   :  { %v693_v38 = vmul.f32 0.03125, %v561_v52  ;;  %2464 = vrsqrt.f32 %v756_v13  ;;  %2326 = vmatmul.mubr.msk.f32.gmra.mrb[22].mxu1 %vm86_vm0, %v1051_v57  ;;  %v982_v16 = vmul.f32 %v3359_v3, %v912_v19  ;;  %v4040_v52 = vld [vmem:[#allocation9_spill] sm:$0xff] }
 0x19c   :  { %v2455_v50 = vpop.eup %2454  ;;  %v788_v39 = vadd.f32 1e-05, %v724_v42  ;;  %v951_v40 = vmul.f32 %v3359_v3, %v881_v45  ;;  %2280 = vmatprep.mubr.msk.f32.mxu0 %vm86_vm0, %v1020_v20  ;;  %v2480_v42 = vld [vmem:[%s3941_s1] ss:$0 sm:$0xff] }
 0x19d   :  { %v757_v31 = vadd.f32 1e-05, %v693_v38  ;;  %v2457_v34 = vpop.eup %2456  ;;  %v657_v1 = vpop.xlane.xlu1 %656  ;;  %v1052_v27 = vadd.f32 %v3365_v18, %v982_v16  ;;  %v913_v14 = vmul.f32 %v2455_v50, %v4034_v61  ;;  %v2481_v20 = vld [vmem:[%s3942_s2] ss:$0 sm:$0xff] }
 0x19e   :  { %v564_v10 = vpop.xlane.xlu0 %563  ;;  %2466 = vrsqrt.f32 %v788_v39  ;;  %v725_v36 = vmul.f32 0.03125, %v657_v1  ;;  %v1021_v8 = vadd.f32 %v3365_v18, %v951_v40  ;;  %v882_v26 = vmul.f32 %v2457_v34, %v4035_v17 }
 0x19f   :  { %v694_v51 = vmul.f32 0.03125, %v564_v10  ;;  %2468 = vrsqrt.f32 %v757_v31  ;;  %2328 = vmatprep.mubr.msk.f32.mxu1 %vm86_vm0, %v1052_v27  ;;  %v983_v9 = vmul.f32 %v3359_v3, %v913_v14  ;;  %v4043_v31 = vld [vmem:[#allocation12_spill] sm:$0xff]  ;;  %v4044_v14 = vld [vmem:[#allocation13_spill] sm:$0xff] }
 0x1a0   :  { %v2459_v59 = vpop.eup %2458  ;;  %v789_v49 = vadd.f32 1e-05, %v725_v36  ;;  %2281 = vmatmul.mubr.msk.f32.gmra.mrb[24].mxu0 %vm86_vm0, %v1021_v8  ;;  %v952_v41 = vmul.f32 %v3359_v3, %v882_v26  ;;  %v4045_v8 = vld [vmem:[#allocation14_spill] sm:$0xff] }
 0x1a1   :  { %v758_v54 = vadd.f32 1e-05, %v694_v51  ;;  %v2461_v32 = vpop.eup %2460  ;;  %v660_v6 = vpop.xlane.xlu1 %659  ;;  %v1053_v55 = vadd.f32 %v3365_v18, %v983_v9  ;;  %v914_v33 = vmul.f32 %v2459_v59, %v4036_v4 }
 0x1a2   :  { %v567_v35 = vpop.xlane.xlu0 %566  ;;  %2470 = vrsqrt.f32 %v789_v49  ;;  %v726_v2 = vmul.f32 0.03125, %v660_v6  ;;  %v883_v0 = vmul.f32 %v2461_v32, %v4037_v37  ;;  %v1022_v58 = vadd.f32 %v3365_v18, %v952_v41 }
 0x1a3   :  { %v695_v23 = vmul.f32 0.03125, %v567_v35  ;;  %2472 = vrsqrt.f32 %v758_v54  ;;  %2329 = vmatmul.mubr.msk.f32.gmra.mrb[24].mxu1 %vm86_vm0, %v1053_v55  ;;  %v984_v28 = vmul.f32 %v3359_v3, %v914_v33  ;;  %v4046_v54 = vld [vmem:[#allocation22_spill] sm:$0xff] }
 0x1a4   :  { %v2463_v60 = vpop.eup %2462  ;;  %v790_v7 = vadd.f32 1e-05, %v726_v2  ;;  %v953_v43 = vmul.f32 %v3359_v3, %v883_v0  ;;  %2283 = vmatprep.mubr.msk.f32.mxu0 %vm86_vm0, %v1022_v58  ;;  %v3617_v55 = vld [vmem:[%s3943_s4] ss:$0 sm:$0xff] }
 0x1a5   :  { %v759_v63 = vadd.f32 1e-05, %v695_v23  ;;  %v2465_v53 = vpop.eup %2464  ;;  %v663_v21 = vpop.xlane.xlu1 %662  ;;  %v1054_v24 = vadd.f32 %v3365_v18, %v984_v28  ;;  %v915_v29 = vmul.f32 %v2463_v60, %v4038_v30 }
 0x1a6   :  { %2474 = vrsqrt.f32 %v790_v7  ;;  %v727_v11 = vmul.f32 0.03125, %v663_v21  ;;  %v1023_v25 = vadd.f32 %v3365_v18, %v953_v43  ;;  %v884_v47 = vmul.f32 %v2465_v53, %v4039_v48 }
 0x1a7   :  { %2476 = vrsqrt.f32 %v759_v63  ;;  %2331 = vmatprep.mubr.msk.f32.mxu1 %vm86_vm0, %v1054_v24  ;;  %v985_v44 = vmul.f32 %v3359_v3, %v915_v29 }
 0x1a8   :  { %v2467_v62 = vpop.eup %2466  ;;  %v791_v5 = vadd.f32 1e-05, %v727_v11  ;;  %2284 = vmatmul.mubr.msk.f32.gmra.mrb[26].mxu0 %vm86_vm0, %v1023_v25  ;;  %v954_v13 = vmul.f32 %v3359_v3, %v884_v47 }
 0x1a9   :  { %v2469_v12 = vpop.eup %2468  ;;  %v1055_v56 = vadd.f32 %v3365_v18, %v985_v44  ;;  %v916_v22 = vmul.f32 %v2467_v62, %v4040_v52 }
 0x1aa   :  { %2478 = vrsqrt.f32 %v791_v5  ;;  %v1024_v57 = vadd.f32 %v3365_v18, %v954_v13  ;;  %v885_v19 = vmul.f32 %v2469_v12, %v4041_v15  ;;  %v4042_v18 = vld [vmem:[#allocation11_spill] sm:$0xff] }
 0x1ab   :  { %2332 = vmatmul.mubr.msk.f32.gmra.mrb[26].mxu1 %vm86_vm0, %v1055_v56  ;;  %v986_v38 = vmul.f32 %v2480_v42, %v916_v22 }
 0x1ac   :  { %v2471_v46 = vpop.eup %2470  ;;  %2286 = vmatprep.mubr.msk.f32.mxu0 %vm86_vm0, %v1024_v57  ;;  %v955_v3 = vmul.f32 %v2480_v42, %v885_v19 }
 0x1ad   :  { %v2473_v45 = vpop.eup %2472  ;;  %v1056_v16 = vadd.f32 %v2481_v20, %v986_v38  ;;  %v917_v50 = vmul.f32 %v2471_v46, %v4042_v18 }
 0x1ae   :  { %v1025_v39 = vadd.f32 %v2481_v20, %v955_v3  ;;  %v886_v40 = vmul.f32 %v2473_v45, %v4043_v31 }
 0x1af   :  { %2334 = vmatprep.mubr.msk.f32.mxu1 %vm86_vm0, %v1056_v16  ;;  %v987_v34 = vmul.f32 %v2480_v42, %v917_v50 }
 0x1b0   :  { %v2475_v1 = vpop.eup %2474  ;;  %2287 = vmatmul.mubr.msk.f32.gmra.mrb[28].mxu0 %vm86_vm0, %v1025_v39  ;;  %v956_v10 = vmul.f32 %v2480_v42, %v886_v40 }
 0x1b1   :  { %v2477_v27 = vpop.eup %2476  ;;  %v1057_v61 = vadd.f32 %v2481_v20, %v987_v34  ;;  %v918_v36 = vmul.f32 %v2475_v1, %v4044_v14 }
 0x1b2   :  { %v1026_v51 = vadd.f32 %v2481_v20, %v956_v10  ;;  %v887_v17 = vmul.f32 %v2477_v27, %v4045_v8 }
 0x1b3   :  { %2335 = vmatmul.mubr.msk.f32.gmra.mrb[28].mxu1 %vm86_vm0, %v1057_v61  ;;  %v988_v26 = vmul.f32 %v2480_v42, %v918_v36 }
 0x1b4   :  { %v2479_v9 = vpop.eup %2478  ;;  %2289 = vmatprep.mubr.msk.f32.mxu0 %vm86_vm0, %v1026_v51  ;;  %v957_v59 = vmul.f32 %v2480_v42, %v887_v17 }
 0x1b5   :  { %v1058_v49 = vadd.f32 %v2481_v20, %v988_v26  ;;  %v919_v32 = vmul.f32 %v2479_v9, %v4046_v54 }
 0x1b6   :  { %v1027_v6 = vadd.f32 %v2481_v20, %v957_v59 }
 0x1b7   :  { %2337 = vmatprep.mubr.msk.f32.mxu1 %vm86_vm0, %v1058_v49  ;;  %v989_v35 = vmul.f32 %v2480_v42, %v919_v32 }
 0x1b8   :  { %2290 = vmatmul.mubr.msk.f32.gmra.mrb[30].mxu0 %vm86_vm0, %v1027_v6 }
 0x1b9   :  { %v1059_v41 = vadd.f32 %v2481_v20, %v989_v35 }
 0x1bb   :  { %2338 = vmatmul.mubr.msk.f32.gmra.mrb[30].mxu1 %vm86_vm0, %v1059_v41 }
 0x213   :  { %v2246_v4 = vpop.f32.mrb[0].mxu0 }
 0x214   :  { %v1335_v33 = vadd.f32 %v2246_v4, %v3617_v55  ;;  %v1329_v2 = vpop.f32.mrb[1].mxu0 }
 0x215   :  { %v1330_v23 = vadd.f32 %v3617_v55, %v1329_v2 }
 0x216   :  { %v2105_v37 = vpack.c.bf16 %v1335_v33, %v1335_v33  ;;  %v2294_v0 = vpop.f32.mrb[0].mxu1 }
 0x217   :  { %v2104_v58 = vpack.c.bf16 %v1330_v23, %v1330_v23  ;;  %v1495_v28 = vadd.f32 %v2294_v0, %v3617_v55  ;;  %v1489_v60 = vpop.f32.mrb[1].mxu1 }
 0x218   :  { %1906 = vst.msk [vmem:[%s3944_s5 + $0x4] sm:$0xf] %vm1904_vm1, %v2105_v37  ;;  %v1490_v7 = vadd.f32 %v3617_v55, %v1489_v60 }
 0x219   :  { %1905 = vst.msk [vmem:[%s3944_s5] sm:$0xf] %vm1904_vm1, %v2104_v58  ;;  %v2137_v63 = vpack.c.bf16 %v1495_v28, %v1495_v28 }
 0x21a   :  { %v2136_v43 = vpack.c.bf16 %v1490_v7, %v1490_v7 }
 0x21b   :  { %1938 = vst.msk [vmem:[%s3944_s5 + $0x84] sm:$0xf] %vm1904_vm1, %v2137_v63  ;;  %v2249_v53 = vpop.f32.mrb[2].mxu0 }
 0x21c   :  { %1937 = vst.msk [vmem:[%s3944_s5 + $0x80] sm:$0xf] %vm1904_vm1, %v2136_v43  ;;  %v1345_v21 = vadd.f32 %v2249_v53, %v3617_v55  ;;  %v1339_v24 = vpop.f32.mrb[3].mxu0 }
 0x21d   :  { %v1340_v30 = vadd.f32 %v3617_v55, %v1339_v24 }
 0x21e   :  { %v2107_v29 = vpack.c.bf16 %v1345_v21, %v1345_v21  ;;  %v2297_v11 = vpop.f32.mrb[2].mxu1 }
 0x21f   :  { %v2106_v25 = vpack.c.bf16 %v1340_v30, %v1340_v30  ;;  %v1505_v48 = vadd.f32 %v2297_v11, %v3617_v55  ;;  %v1499_v47 = vpop.f32.mrb[3].mxu1 }
 0x220   :  { %1908 = vst.msk [vmem:[%s3944_s5 + $0xc] sm:$0xf] %vm1904_vm1, %v2107_v29  ;;  %v1500_v44 = vadd.f32 %v3617_v55, %v1499_v47 }
 0x221   :  { %1907 = vst.msk [vmem:[%s3944_s5 + $0x8] sm:$0xf] %vm1904_vm1, %v2106_v25  ;;  %v2139_v62 = vpack.c.bf16 %v1505_v48, %v1505_v48 }
 0x222   :  { %v2138_v5 = vpack.c.bf16 %v1500_v44, %v1500_v44 }
 0x223   :  { %1940 = vst.msk [vmem:[%s3944_s5 + $0x8c] sm:$0xf] %vm1904_vm1, %v2139_v62  ;;  %v2252_v13 = vpop.f32.mrb[4].mxu0 }
 0x224   :  { %1939 = vst.msk [vmem:[%s3944_s5 + $0x88] sm:$0xf] %vm1904_vm1, %v2138_v5  ;;  %v1355_v12 = vadd.f32 %v2252_v13, %v3617_v55  ;;  %v1349_v56 = vpop.f32.mrb[5].mxu0 }
 0x225   :  { %v1350_v52 = vadd.f32 %v3617_v55, %v1349_v56 }
 0x226   :  { %v2109_v22 = vpack.c.bf16 %v1355_v12, %v1355_v12  ;;  %v2300_v57 = vpop.f32.mrb[4].mxu1 }
 0x227   :  { %v2108_v15 = vpack.c.bf16 %v1350_v52, %v1350_v52  ;;  %v1515_v19 = vadd.f32 %v2300_v57, %v3617_v55  ;;  %v1509_v42 = vpop.f32.mrb[5].mxu1 }
 0x228   :  { %1910 = vst.msk [vmem:[%s3944_s5 + $0x14] sm:$0xf] %vm1904_vm1, %v2109_v22  ;;  %v1510_v38 = vadd.f32 %v3617_v55, %v1509_v42 }
 0x229   :  { %1909 = vst.msk [vmem:[%s3944_s5 + $0x10] sm:$0xf] %vm1904_vm1, %v2108_v15  ;;  %v2141_v46 = vpack.c.bf16 %v1515_v19, %v1515_v19 }
 0x22a   :  { %v2140_v3 = vpack.c.bf16 %v1510_v38, %v1510_v38 }
 0x22b   :  { %1942 = vst.msk [vmem:[%s3944_s5 + $0x94] sm:$0xf] %vm1904_vm1, %v2141_v46  ;;  %v2255_v45 = vpop.f32.mrb[6].mxu0 }
 0x22c   :  { %1941 = vst.msk [vmem:[%s3944_s5 + $0x90] sm:$0xf] %vm1904_vm1, %v2140_v3  ;;  %v1365_v20 = vadd.f32 %v2255_v45, %v3617_v55  ;;  %v1359_v16 = vpop.f32.mrb[7].mxu0 }
 0x22d   :  { %v1360_v18 = vadd.f32 %v3617_v55, %v1359_v16 }
 0x22e   :  { %v2111_v50 = vpack.c.bf16 %v1365_v20, %v1365_v20  ;;  %v2303_v39 = vpop.f32.mrb[6].mxu1 }
 0x22f   :  { %v2110_v31 = vpack.c.bf16 %v1360_v18, %v1360_v18  ;;  %v1525_v40 = vadd.f32 %v2303_v39, %v3617_v55  ;;  %v1519_v34 = vpop.f32.mrb[7].mxu1 }
 0x230   :  { %1912 = vst.msk [vmem:[%s3944_s5 + $0x1c] sm:$0xf] %vm1904_vm1, %v2111_v50  ;;  %v1520_v1 = vadd.f32 %v3617_v55, %v1519_v34 }
 0x231   :  { %1911 = vst.msk [vmem:[%s3944_s5 + $0x18] sm:$0xf] %vm1904_vm1, %v2110_v31  ;;  %v2143_v10 = vpack.c.bf16 %v1525_v40, %v1525_v40 }
 0x232   :  { %v2142_v27 = vpack.c.bf16 %v1520_v1, %v1520_v1 }
 0x233   :  { %1944 = vst.msk [vmem:[%s3944_s5 + $0x9c] sm:$0xf] %vm1904_vm1, %v2143_v10  ;;  %v2258_v61 = vpop.f32.mrb[8].mxu0 }
 0x234   :  { %1943 = vst.msk [vmem:[%s3944_s5 + $0x98] sm:$0xf] %vm1904_vm1, %v2142_v27  ;;  %v1375_v14 = vadd.f32 %v2258_v61, %v3617_v55  ;;  %v1369_v36 = vpop.f32.mrb[9].mxu0 }
 0x235   :  { %v1370_v51 = vadd.f32 %v3617_v55, %v1369_v36 }
 0x236   :  { %v2113_v8 = vpack.c.bf16 %v1375_v14, %v1375_v14  ;;  %v2306_v17 = vpop.f32.mrb[8].mxu1 }
 0x237   :  { %v2112_v26 = vpack.c.bf16 %v1370_v51, %v1370_v51  ;;  %v1535_v9 = vadd.f32 %v2306_v17, %v3617_v55  ;;  %v1529_v59 = vpop.f32.mrb[9].mxu1 }
 0x238   :  { %1914 = vst.msk [vmem:[%s3944_s5 + $0x24] sm:$0xf] %vm1904_vm1, %v2113_v8  ;;  %v1530_v49 = vadd.f32 %v3617_v55, %v1529_v59 }
 0x239   :  { %1913 = vst.msk [vmem:[%s3944_s5 + $0x20] sm:$0xf] %vm1904_vm1, %v2112_v26  ;;  %v2145_v54 = vpack.c.bf16 %v1535_v9, %v1535_v9 }
 0x23a   :  { %v2144_v32 = vpack.c.bf16 %v1530_v49, %v1530_v49 }
 0x23b   :  { %1946 = vst.msk [vmem:[%s3944_s5 + $0xa4] sm:$0xf] %vm1904_vm1, %v2145_v54  ;;  %v2261_v6 = vpop.f32.mrb[10].mxu0 }
 0x23c   :  { %1945 = vst.msk [vmem:[%s3944_s5 + $0xa0] sm:$0xf] %vm1904_vm1, %v2144_v32  ;;  %v1385_v35 = vadd.f32 %v2261_v6, %v3617_v55  ;;  %v1379_v41 = vpop.f32.mrb[11].mxu0 }
 0x23d   :  { %v1380_v4 = vadd.f32 %v3617_v55, %v1379_v41 }
 0x23e   :  { %v2115_v33 = vpack.c.bf16 %v1385_v35, %v1385_v35  ;;  %v2309_v2 = vpop.f32.mrb[10].mxu1 }
 0x23f   :  { %v2114_v23 = vpack.c.bf16 %v1380_v4, %v1380_v4  ;;  %v1545_v37 = vadd.f32 %v2309_v2, %v3617_v55  ;;  %v1539_v0 = vpop.f32.mrb[11].mxu1 }
 0x240   :  { %1916 = vst.msk [vmem:[%s3944_s5 + $0x2c] sm:$0xf] %vm1904_vm1, %v2115_v33  ;;  %v1540_v58 = vadd.f32 %v3617_v55, %v1539_v0 }
 0x241   :  { %1915 = vst.msk [vmem:[%s3944_s5 + $0x28] sm:$0xf] %vm1904_vm1, %v2114_v23  ;;  %v2147_v28 = vpack.c.bf16 %v1545_v37, %v1545_v37 }
 0x242   :  { %v2146_v60 = vpack.c.bf16 %v1540_v58, %v1540_v58 }
 0x243   :  { %1948 = vst.msk [vmem:[%s3944_s5 + $0xac] sm:$0xf] %vm1904_vm1, %v2147_v28  ;;  %v2264_v7 = vpop.f32.mrb[12].mxu0 }
 0x244   :  { %1947 = vst.msk [vmem:[%s3944_s5 + $0xa8] sm:$0xf] %vm1904_vm1, %v2146_v60  ;;  %v1395_v63 = vadd.f32 %v2264_v7, %v3617_v55  ;;  %v1389_v43 = vpop.f32.mrb[13].mxu0 }
 0x245   :  { %v1390_v53 = vadd.f32 %v3617_v55, %v1389_v43 }
 0x246   :  { %v2117_v21 = vpack.c.bf16 %v1395_v63, %v1395_v63  ;;  %v2312_v24 = vpop.f32.mrb[12].mxu1 }
 0x247   :  { %v2116_v30 = vpack.c.bf16 %v1390_v53, %v1390_v53  ;;  %v1555_v29 = vadd.f32 %v2312_v24, %v3617_v55  ;;  %v1549_v11 = vpop.f32.mrb[13].mxu1 }
 0x248   :  { %1918 = vst.msk [vmem:[%s3944_s5 + $0x34] sm:$0xf] %vm1904_vm1, %v2117_v21  ;;  %v1550_v25 = vadd.f32 %v3617_v55, %v1549_v11 }
 0x249   :  { %1917 = vst.msk [vmem:[%s3944_s5 + $0x30] sm:$0xf] %vm1904_vm1, %v2116_v30  ;;  %v2149_v48 = vpack.c.bf16 %v1555_v29, %v1555_v29 }
 0x24a   :  { %v2148_v47 = vpack.c.bf16 %v1550_v25, %v1550_v25 }
 0x24b   :  { %1950 = vst.msk [vmem:[%s3944_s5 + $0xb4] sm:$0xf] %vm1904_vm1, %v2149_v48  ;;  %v2267_v44 = vpop.f32.mrb[14].mxu0 }
 0x24c   :  { %1949 = vst.msk [vmem:[%s3944_s5 + $0xb0] sm:$0xf] %vm1904_vm1, %v2148_v47  ;;  %v1405_v62 = vadd.f32 %v2267_v44, %v3617_v55  ;;  %v1399_v5 = vpop.f32.mrb[15].mxu0 }
 0x24d   :  { %v1400_v13 = vadd.f32 %v3617_v55, %v1399_v5 }
 0x24e   :  { %v2119_v12 = vpack.c.bf16 %v1405_v62, %v1405_v62  ;;  %v2315_v56 = vpop.f32.mrb[14].mxu1 }
 0x24f   :  { %v2118_v52 = vpack.c.bf16 %v1400_v13, %v1400_v13  ;;  %v1565_v22 = vadd.f32 %v2315_v56, %v3617_v55  ;;  %v1559_v57 = vpop.f32.mrb[15].mxu1 }
 0x250   :  { %1920 = vst.msk [vmem:[%s3944_s5 + $0x3c] sm:$0xf] %vm1904_vm1, %v2119_v12  ;;  %v1560_v15 = vadd.f32 %v3617_v55, %v1559_v57 }
 0x251   :  { %1919 = vst.msk [vmem:[%s3944_s5 + $0x38] sm:$0xf] %vm1904_vm1, %v2118_v52  ;;  %v2151_v19 = vpack.c.bf16 %v1565_v22, %v1565_v22 }
 0x252   :  { %v2150_v42 = vpack.c.bf16 %v1560_v15, %v1560_v15 }
 0x253   :  { %1952 = vst.msk [vmem:[%s3944_s5 + $0xbc] sm:$0xf] %vm1904_vm1, %v2151_v19  ;;  %v2270_v38 = vpop.f32.mrb[16].mxu0 }
 0x254   :  { %1951 = vst.msk [vmem:[%s3944_s5 + $0xb8] sm:$0xf] %vm1904_vm1, %v2150_v42  ;;  %v1415_v46 = vadd.f32 %v2270_v38, %v3617_v55  ;;  %v1409_v3 = vpop.f32.mrb[17].mxu0 }
 0x255   :  { %v1410_v45 = vadd.f32 %v3617_v55, %v1409_v3 }
 0x256   :  { %v2121_v20 = vpack.c.bf16 %v1415_v46, %v1415_v46  ;;  %v2318_v16 = vpop.f32.mrb[16].mxu1 }
 0x257   :  { %v2120_v18 = vpack.c.bf16 %v1410_v45, %v1410_v45  ;;  %v1575_v50 = vadd.f32 %v2318_v16, %v3617_v55  ;;  %v1569_v39 = vpop.f32.mrb[17].mxu1 }
 0x258   :  { %1922 = vst.msk [vmem:[%s3944_s5 + $0x44] sm:$0xf] %vm1904_vm1, %v2121_v20  ;;  %v1570_v31 = vadd.f32 %v3617_v55, %v1569_v39 }
 0x259   :  { %1921 = vst.msk [vmem:[%s3944_s5 + $0x40] sm:$0xf] %vm1904_vm1, %v2120_v18  ;;  %v2153_v40 = vpack.c.bf16 %v1575_v50, %v1575_v50 }
 0x25a   :  { %v2152_v34 = vpack.c.bf16 %v1570_v31, %v1570_v31 }
 0x25b   :  { %1954 = vst.msk [vmem:[%s3944_s5 + $0xc4] sm:$0xf] %vm1904_vm1, %v2153_v40  ;;  %v2273_v1 = vpop.f32.mrb[18].mxu0 }
 0x25c   :  { %1953 = vst.msk [vmem:[%s3944_s5 + $0xc0] sm:$0xf] %vm1904_vm1, %v2152_v34  ;;  %v1425_v10 = vadd.f32 %v2273_v1, %v3617_v55  ;;  %v1419_v27 = vpop.f32.mrb[19].mxu0 }
 0x25d   :  { %v1420_v61 = vadd.f32 %v3617_v55, %v1419_v27 }
 0x25e   :  { %v2123_v14 = vpack.c.bf16 %v1425_v10, %v1425_v10  ;;  %v2321_v36 = vpop.f32.mrb[18].mxu1 }
 0x25f   :  { %v2122_v51 = vpack.c.bf16 %v1420_v61, %v1420_v61  ;;  %v1585_v8 = vadd.f32 %v2321_v36, %v3617_v55  ;;  %v1579_v17 = vpop.f32.mrb[19].mxu1 }
 0x260   :  { %1924 = vst.msk [vmem:[%s3944_s5 + $0x4c] sm:$0xf] %vm1904_vm1, %v2123_v14  ;;  %v1580_v26 = vadd.f32 %v3617_v55, %v1579_v17 }
 0x261   :  { %1923 = vst.msk [vmem:[%s3944_s5 + $0x48] sm:$0xf] %vm1904_vm1, %v2122_v51  ;;  %v2155_v9 = vpack.c.bf16 %v1585_v8, %v1585_v8 }
 0x262   :  { %v2154_v59 = vpack.c.bf16 %v1580_v26, %v1580_v26 }
 0x263   :  { %1956 = vst.msk [vmem:[%s3944_s5 + $0xcc] sm:$0xf] %vm1904_vm1, %v2155_v9  ;;  %v2276_v49 = vpop.f32.mrb[20].mxu0 }
 0x264   :  { %1955 = vst.msk [vmem:[%s3944_s5 + $0xc8] sm:$0xf] %vm1904_vm1, %v2154_v59  ;;  %v1435_v54 = vadd.f32 %v2276_v49, %v3617_v55  ;;  %v1429_v32 = vpop.f32.mrb[21].mxu0 }
 0x265   :  { %v1430_v6 = vadd.f32 %v3617_v55, %v1429_v32 }
 0x266   :  { %v2125_v35 = vpack.c.bf16 %v1435_v54, %v1435_v54  ;;  %v2324_v41 = vpop.f32.mrb[20].mxu1 }
 0x267   :  { %v2124_v4 = vpack.c.bf16 %v1430_v6, %v1430_v6  ;;  %v1595_v33 = vadd.f32 %v2324_v41, %v3617_v55  ;;  %v1589_v2 = vpop.f32.mrb[21].mxu1 }
 0x268   :  { %1926 = vst.msk [vmem:[%s3944_s5 + $0x54] sm:$0xf] %vm1904_vm1, %v2125_v35  ;;  %v1590_v23 = vadd.f32 %v3617_v55, %v1589_v2 }
 0x269   :  { %1925 = vst.msk [vmem:[%s3944_s5 + $0x50] sm:$0xf] %vm1904_vm1, %v2124_v4  ;;  %v2157_v37 = vpack.c.bf16 %v1595_v33, %v1595_v33 }
 0x26a   :  { %v2156_v0 = vpack.c.bf16 %v1590_v23, %v1590_v23 }
 0x26b   :  { %1958 = vst.msk [vmem:[%s3944_s5 + $0xd4] sm:$0xf] %vm1904_vm1, %v2157_v37  ;;  %v2279_v58 = vpop.f32.mrb[22].mxu0 }
 0x26c   :  { %1957 = vst.msk [vmem:[%s3944_s5 + $0xd0] sm:$0xf] %vm1904_vm1, %v2156_v0  ;;  %v1445_v28 = vadd.f32 %v2279_v58, %v3617_v55  ;;  %v1439_v60 = vpop.f32.mrb[23].mxu0 }
 0x26d   :  { %v1440_v7 = vadd.f32 %v3617_v55, %v1439_v60 }
 0x26e   :  { %v2127_v63 = vpack.c.bf16 %v1445_v28, %v1445_v28  ;;  %v2327_v43 = vpop.f32.mrb[22].mxu1 }
 0x26f   :  { %v2126_v53 = vpack.c.bf16 %v1440_v7, %v1440_v7  ;;  %v1605_v21 = vadd.f32 %v2327_v43, %v3617_v55  ;;  %v1599_v24 = vpop.f32.mrb[23].mxu1 }
 0x270   :  { %1928 = vst.msk [vmem:[%s3944_s5 + $0x5c] sm:$0xf] %vm1904_vm1, %v2127_v63  ;;  %v1600_v30 = vadd.f32 %v3617_v55, %v1599_v24 }
 0x271   :  { %1927 = vst.msk [vmem:[%s3944_s5 + $0x58] sm:$0xf] %vm1904_vm1, %v2126_v53  ;;  %v2159_v29 = vpack.c.bf16 %v1605_v21, %v1605_v21 }
 0x272   :  { %v2158_v11 = vpack.c.bf16 %v1600_v30, %v1600_v30 }
 0x273   :  { %1960 = vst.msk [vmem:[%s3944_s5 + $0xdc] sm:$0xf] %vm1904_vm1, %v2159_v29  ;;  %v2282_v25 = vpop.f32.mrb[24].mxu0 }
 0x274   :  { %1959 = vst.msk [vmem:[%s3944_s5 + $0xd8] sm:$0xf] %vm1904_vm1, %v2158_v11  ;;  %v1455_v48 = vadd.f32 %v2282_v25, %v3617_v55  ;;  %v1449_v47 = vpop.f32.mrb[25].mxu0 }
 0x275   :  { %v1450_v44 = vadd.f32 %v3617_v55, %v1449_v47 }
 0x276   :  { %v2129_v62 = vpack.c.bf16 %v1455_v48, %v1455_v48  ;;  %v2330_v5 = vpop.f32.mrb[24].mxu1 }
 0x277   :  { %v2128_v13 = vpack.c.bf16 %v1450_v44, %v1450_v44  ;;  %v1615_v12 = vadd.f32 %v2330_v5, %v3617_v55  ;;  %v1609_v56 = vpop.f32.mrb[25].mxu1 }
 0x278   :  { %1930 = vst.msk [vmem:[%s3944_s5 + $0x64] sm:$0xf] %vm1904_vm1, %v2129_v62  ;;  %v1610_v52 = vadd.f32 %v3617_v55, %v1609_v56 }
 0x279   :  { %1929 = vst.msk [vmem:[%s3944_s5 + $0x60] sm:$0xf] %vm1904_vm1, %v2128_v13  ;;  %v2161_v22 = vpack.c.bf16 %v1615_v12, %v1615_v12 }
 0x27a   :  { %v2160_v57 = vpack.c.bf16 %v1610_v52, %v1610_v52 }
 0x27b   :  { %1962 = vst.msk [vmem:[%s3944_s5 + $0xe4] sm:$0xf] %vm1904_vm1, %v2161_v22  ;;  %v2285_v15 = vpop.f32.mrb[26].mxu0 }
 0x27c   :  { %1961 = vst.msk [vmem:[%s3944_s5 + $0xe0] sm:$0xf] %vm1904_vm1, %v2160_v57  ;;  %v1465_v19 = vadd.f32 %v2285_v15, %v3617_v55  ;;  %v1459_v42 = vpop.f32.mrb[27].mxu0 }
 0x27d   :  { %v1460_v38 = vadd.f32 %v3617_v55, %v1459_v42 }
 0x27e   :  { %v2131_v46 = vpack.c.bf16 %v1465_v19, %v1465_v19  ;;  %v2333_v3 = vpop.f32.mrb[26].mxu1 }
 0x27f   :  { %v2130_v45 = vpack.c.bf16 %v1460_v38, %v1460_v38  ;;  %v1625_v20 = vadd.f32 %v2333_v3, %v3617_v55  ;;  %v1619_v16 = vpop.f32.mrb[27].mxu1 }
 0x280   :  { %1932 = vst.msk [vmem:[%s3944_s5 + $0x6c] sm:$0xf] %vm1904_vm1, %v2131_v46  ;;  %v1620_v18 = vadd.f32 %v3617_v55, %v1619_v16 }
 0x281   :  { %1931 = vst.msk [vmem:[%s3944_s5 + $0x68] sm:$0xf] %vm1904_vm1, %v2130_v45  ;;  %v2163_v50 = vpack.c.bf16 %v1625_v20, %v1625_v20 }
 0x282   :  { %v2162_v39 = vpack.c.bf16 %v1620_v18, %v1620_v18 }
 0x283   :  { %1964 = vst.msk [vmem:[%s3944_s5 + $0xec] sm:$0xf] %vm1904_vm1, %v2163_v50  ;;  %v2288_v31 = vpop.f32.mrb[28].mxu0 }
 0x284   :  { %1963 = vst.msk [vmem:[%s3944_s5 + $0xe8] sm:$0xf] %vm1904_vm1, %v2162_v39  ;;  %v1475_v40 = vadd.f32 %v2288_v31, %v3617_v55  ;;  %v1469_v34 = vpop.f32.mrb[29].mxu0 }
 0x285   :  { %v1470_v1 = vadd.f32 %v3617_v55, %v1469_v34 }
 0x286   :  { %v2133_v10 = vpack.c.bf16 %v1475_v40, %v1475_v40  ;;  %v2336_v27 = vpop.f32.mrb[28].mxu1 }
 0x287   :  { %v2132_v61 = vpack.c.bf16 %v1470_v1, %v1470_v1  ;;  %v1635_v14 = vadd.f32 %v2336_v27, %v3617_v55  ;;  %v1629_v36 = vpop.f32.mrb[29].mxu1 }
 0x288   :  { %1934 = vst.msk [vmem:[%s3944_s5 + $0x74] sm:$0xf] %vm1904_vm1, %v2133_v10  ;;  %v1630_v51 = vadd.f32 %v3617_v55, %v1629_v36 }
 0x289   :  { %1933 = vst.msk [vmem:[%s3944_s5 + $0x70] sm:$0xf] %vm1904_vm1, %v2132_v61  ;;  %v2165_v8 = vpack.c.bf16 %v1635_v14, %v1635_v14 }
 0x28a   :  { %v2164_v17 = vpack.c.bf16 %v1630_v51, %v1630_v51 }
 0x28b   :  { %1966 = vst.msk [vmem:[%s3944_s5 + $0xf4] sm:$0xf] %vm1904_vm1, %v2165_v8  ;;  %v2291_v26 = vpop.f32.mrb[30].mxu0 }
 0x28c   :  { %1965 = vst.msk [vmem:[%s3944_s5 + $0xf0] sm:$0xf] %vm1904_vm1, %v2164_v17  ;;  %v1485_v9 = vadd.f32 %v2291_v26, %v3617_v55  ;;  %v1479_v59 = vpop.f32.mrb[31].mxu0 }
 0x28d   :  { %v1480_v49 = vadd.f32 %v3617_v55, %v1479_v59 }
 0x28e   :  { %v2135_v54 = vpack.c.bf16 %v1485_v9, %v1485_v9  ;;  %v2339_v32 = vpop.f32.mrb[30].mxu1 }
 0x28f   :  { %v2134_v6 = vpack.c.bf16 %v1480_v49, %v1480_v49  ;;  %v1645_v35 = vadd.f32 %v2339_v32, %v3617_v55  ;;  %v1639_v41 = vpop.f32.mrb[31].mxu1 }
 0x290   :  { %1936 = vst.msk [vmem:[%s3944_s5 + $0x7c] sm:$0xf] %vm1904_vm1, %v2135_v54  ;;  %v1640_v4 = vadd.f32 %v3617_v55, %v1639_v41 }
 0x291   :  { %1935 = vst.msk [vmem:[%s3944_s5 + $0x78] sm:$0xf] %vm1904_vm1, %v2134_v6  ;;  %v2167_v33 = vpack.c.bf16 %v1645_v35, %v1645_v35 }
 0x292   :  { %v2166_v2 = vpack.c.bf16 %v1640_v4, %v1640_v4 }
 0x293   :  { %1968 = vst.msk [vmem:[%s3944_s5 + $0xfc] sm:$0xf] %vm1904_vm1, %v2167_v33 }
 0x294   :  { %1967 = vst.msk [vmem:[%s3944_s5 + $0xf8] sm:$0xf] %vm1904_vm1, %v2166_v2 }

</bundles_post_ra>
